<compile_context>
chip_gen: v5e
topology: v5e:2x2
jax: 0.10.0
libtpu: 0.0.40
codegen_flags: <defaults>
</compile_context>

<pallas_src>
import jax
import jax.numpy as jnp
import numpy as np
from jax import lax
from jax.experimental import pallas as pl
from jax.experimental.pallas import tpu as pltpu

SMALL_NEG_NUM = -1000000.0   # note: applied after 1/t scaling (same as reference);
                             # keep temperature O(1) or this mask value competes.


# ----------------------------------------------------------------------------
# Fused kernel: (pool-folded) projector for both views + contrastive loss
# ----------------------------------------------------------------------------
def _make_fused_kernel(batch_size, proj_dim, temperature, hidden_norm=True):
    B = int(batch_size)        # per-view batch
    D = int(proj_dim)
    inv_t = 1.0 / float(temperature)

    def kernel(fh_ref, fs_ref, w1p_ref, b1_ref, w2_ref, b2_ref,
               logits_ref, loss_ref, lhs_ref, rhs_ref):
        w1p = w1p_ref[...]                         # (C*HW, C) bf16 (pool folded in)
        w2 = w2_ref[...]                           # (C, D)    bf16
        b1 = b1_ref[...]                           # (1, C)    f32
        b2 = b2_ref[...]                           # (1, D)    f32

        def project(f_ref):
            # AdaptiveAvgPool2d((1,1)) + Linear#1 fused into one bf16 MXU matmul.
            h = jnp.dot(f_ref[...], w1p, preferred_element_type=jnp.float32) + b1
            h = jnp.maximum(h, 0.0)                                    # ReLU
            z = jnp.dot(h.astype(jnp.bfloat16), w2,
                        preferred_element_type=jnp.float32) + b2       # (B, D) f32
            if hidden_norm:  # F.normalize(p=2, dim=-1); rsqrt uses the EUP slot
                ss = jnp.sum(z * z, axis=-1, keepdims=True)
                z = z * lax.rsqrt(jnp.maximum(ss, 1e-24))
            return z

        h1 = project(fh_ref)                       # hand view      (B, D) f32
        h2 = project(fs_ref)                       # standard view  (B, D) f32

        # Assemble LHS = [h1; h2] / t and RHS = [h2; h1] in VMEM scratch (four
        # tiny sublane-masked stores).  One NT matmul of these stacks produces
        # the logits ALREADY in the reference order [[ab, aa], [bb, ba]] — no
        # permutation matmul, no roll — and the loss reads the same array.
        lhs_ref[0:B, :] = h1 * inv_t               # 1/t folded into (2B, D) operand
        lhs_ref[B:2 * B, :] = h2 * inv_t
        rhs_ref[0:B, :] = h2
        rhs_ref[B:2 * B, :] = h1

        nt_dims = (((1,), (1,)), ((), ()))
        logits = lax.dot_general(lhs_ref[...].astype(jnp.bfloat16),
                                 rhs_ref[...].astype(jnp.bfloat16), nt_dims,
                                 preferred_element_type=jnp.float32)   # (2B, 2B)

        # Self-similarity (aa/bb) diagonals sit exactly where |row - col| == B
        # in this layout -> one elementwise where(), no modulo, no extra matmul.
        row = lax.broadcasted_iota(jnp.int32, (2 * B, 2 * B), 0)
        col = lax.broadcasted_iota(jnp.int32, (2 * B, 2 * B), 1)
        logits = jnp.where(jnp.abs(row - col) == B, SMALL_NEG_NUM, logits)
        logits_ref[...] = logits                   # one lane-dense full-block store

        # F.cross_entropy(logits, eye(2B).argmax(1)) == mean_i(lse_i - logits[i,i]).
        # logits[i, i] = <h1[i], h2[i]> / t for BOTH row halves, so the correct
        # term is 2 * sum(h1 * h2) / t computed directly from the two halves.
        m = jnp.max(logits, axis=-1, keepdims=True)
        lse = m + jnp.log(jnp.sum(jnp.exp(logits - m), axis=-1, keepdims=True))
        lse_total = jnp.sum(lse, axis=0, keepdims=True)                 # (1, 1)
        corr_total = jnp.sum(h1 * h2, keepdims=True)                    # (1, 1)
        loss_ref[...] = (lse_total - 2.0 * inv_t * corr_total) / (2.0 * B)

    return kernel


def prototype_contrastive(cnn_hand, cnn_standard, w1, b1, w2, b2,
                          temperature=1.0, hidden_norm=True):
    """avgpool -> shared projector -> concat -> contrastive_loss, fused into a
    single pallas_call.  cnn_* are NCHW feature maps; weights stored (in, out)."""
    N, C, H, W = cnn_hand.shape
    assert cnn_standard.shape == cnn_hand.shape
    B, HW, D = N, H * W, w2.shape[1]

    # Free view reshapes — NO wrapper-side concat (that was a full HBM write +
    # re-read of both maps).  bf16 halves the feat DMA / VMEM footprint; a real
    # encoder would emit bf16 directly (the cast fuses into its epilogue).
    feat_h = cnn_hand.reshape(B, C * HW).astype(jnp.bfloat16)
    feat_s = cnn_standard.reshape(B, C * HW).astype(jnp.bfloat16)

    # Fold AdaptiveAvgPool2d((1,1)) into the first projector matmul on the host:
    #   pooled @ W1  ==  feat @ (repeat(W1, HW, axis=0) / HW)
    # so the kernel never constructs a (C*HW, C) pooling matrix on-chip.
    w1_pool = (jnp.repeat(w1, HW, axis=0) * (1.0 / HW)).astype(jnp.bfloat16)

    vmem_full = pl.BlockSpec(memory_space=pltpu.MemorySpace.VMEM)  # whole array in VMEM

    logits, loss = pl.pallas_call(
        _make_fused_kernel(B, D, temperature, hidden_norm),
        out_shape=(jax.ShapeDtypeStruct((2 * B, 2 * B), jnp.float32),
                   jax.ShapeDtypeStruct((1, 1), jnp.float32)),
        # No grid: single invocation, single-buffered whole-array operands
        # (no double-buffering waste from a degenerate grid=(1,) pipeline).
        in_specs=[vmem_full] * 6,
        out_specs=(vmem_full, vmem_full),
        scratch_shapes=[pltpu.VMEM((2 * B, D), jnp.float32),   # LHS stack [h1; h2]/t
                        pltpu.VMEM((2 * B, D), jnp.float32)],  # RHS stack [h2; h1]
        compiler_params=pltpu.CompilerParams(vmem_limit_bytes=32 * 1024 * 1024),
    )(feat_h, feat_s, w1_pool, b1.astype(jnp.float32),
      w2.astype(jnp.bfloat16), b2.astype(jnp.float32))

    labels = jnp.eye(2 * B, dtype=jnp.float32)      # torch.eye(2*batch_size)
    return loss[0, 0], logits, labels


# ----------------------------------------------------------------------------
if __name__ == "__main__":
    key = jax.random.PRNGKey(0)
    N, C, H, W = 4, 32, 8, 8          # per-view batch, encoder out_channel, feature map
    proj_dim = 16
    temperature = 0.5

    k1, k2, k3, k4, k5, k6 = jax.random.split(key, 6)
    # Stand-ins for DenseNet encoder_hand / encoder_standard outputs (NCHW).
    cnn_hand = jax.random.normal(k1, (N, C, H, W), jnp.float32)
    cnn_std = jax.random.normal(k2, (N, C, H, W), jnp.float32)
    # Projector params: Linear(C, C) + ReLU + Linear(C, proj_dim), stored as (in, out).
    w1 = jax.random.normal(k3, (C, C), jnp.float32) * (1.0 / np.sqrt(C))
    b1 = jax.random.normal(k4, (1, C), jnp.float32) * 0.01
    w2 = jax.random.normal(k5, (C, proj_dim), jnp.float32) * (1.0 / np.sqrt(C))
    b2 = jax.random.normal(k6, (1, proj_dim), jnp.float32) * 0.01

    # Fused Pallas path: one launch for pool-folded projector (both views) + loss.
    loss, logits, labels = prototype_contrastive(
        cnn_hand, cnn_std, w1, b1, w2, b2,
        temperature=temperature, hidden_norm=True)
    jax.block_until_ready((loss, logits, labels))

    # ---- pure-JAX reference --------------------------------------------------
    # The kernel's matmul operands are bf16 (f32 accumulate); the reference takes
    # the same bf16-quantised inputs (so the check isolates kernel error from
    # input quantisation) and then follows the torch module exactly in f32.
    w1_q = w1.astype(jnp.bfloat16).astype(jnp.float32)
    w2_q = w2.astype(jnp.bfloat16).astype(jnp.float32)

    def ref_project(cnn):
        fq = cnn.astype(jnp.bfloat16).astype(jnp.float32)
        pooled = fq.reshape(N, C, -1).mean(-1)          # AdaptiveAvgPool2d((1,1))
        h = jnp.maximum(pooled @ w1_q + b1, 0.0)
        return h @ w2_q + b2

    hid = jnp.concatenate([ref_project(cnn_hand), ref_project(cnn_std)], axis=0)
    hn = hid / jnp.maximum(jnp.linalg.norm(hid, axis=-1, keepdims=True), 1e-12)
    r1, r2 = hn[:N], hn[N:]
    aa = r1 @ r1.T / temperature
    bb = r2 @ r2.T / temperature
    ab = r1 @ r2.T / temperature
    ba = r2 @ r1.T / temperature
    eye = jnp.eye(N, dtype=bool)
    aa = jnp.where(eye, SMALL_NEG_NUM, aa)
    bb = jnp.where(eye, SMALL_NEG_NUM, bb)
    ref_logits = jnp.concatenate(
        [jnp.concatenate([ab, aa], axis=1), jnp.concatenate([bb, ba], axis=1)], axis=0)
    lse = jax.nn.logsumexp(ref_logits, axis=-1)
    ref_loss = jnp.mean(lse - ref_logits[jnp.arange(2 * N), jnp.arange(2 * N)])

    assert np.allclose(np.asarray(logits), np.asarray(ref_logits), rtol=2e-2, atol=3e-2)
    assert np.allclose(float(loss), float(ref_loss), rtol=2e-2, atol=2e-2)
    assert np.allclose(np.asarray(labels), np.eye(2 * N))

    print("KERNEL_OK")
</pallas_src>

<mosaic_0001>
module attributes {stable_mosaic.version = 11 : i64} {
  func.func @kernel(%arg0: memref<4x2048xbf16, #tpu.memory_space<vmem>>, %arg1: memref<4x2048xbf16, #tpu.memory_space<vmem>>, %arg2: memref<2048x32xbf16, #tpu.memory_space<vmem>>, %arg3: memref<1x32xf32, #tpu.memory_space<vmem>>, %arg4: memref<32x16xbf16, #tpu.memory_space<vmem>>, %arg5: memref<1x16xf32, #tpu.memory_space<vmem>>, %arg6: memref<8x8xf32, #tpu.memory_space<vmem>>, %arg7: memref<1x1xf32, #tpu.memory_space<vmem>>, %arg8: memref<8x16xf32, #tpu.memory_space<vmem>>, %arg9: memref<8x16xf32, #tpu.memory_space<vmem>>) attributes {dimension_semantics = [], scalar_prefetch = 0 : i64, scratch_operands = 2 : i64, tpu.core_type = #tpu.core_type<tc>} {
    %c0 = arith.constant 0 : index
    %c0_0 = arith.constant 0 : index
    %0 = vector.load %arg2[%c0, %c0_0] : memref<2048x32xbf16, #tpu.memory_space<vmem>>, vector<2048x32xbf16>
    %c0_1 = arith.constant 0 : index
    %c0_2 = arith.constant 0 : index
    %1 = vector.load %arg4[%c0_1, %c0_2] : memref<32x16xbf16, #tpu.memory_space<vmem>>, vector<32x16xbf16>
    %c0_3 = arith.constant 0 : index
    %c0_4 = arith.constant 0 : index
    %2 = vector.load %arg3[%c0_3, %c0_4] : memref<1x32xf32, #tpu.memory_space<vmem>>, vector<1x32xf32>
    %c0_5 = arith.constant 0 : index
    %c0_6 = arith.constant 0 : index
    %3 = vector.load %arg5[%c0_5, %c0_6] : memref<1x16xf32, #tpu.memory_space<vmem>>, vector<1x16xf32>
    %c0_7 = arith.constant 0 : index
    %c0_8 = arith.constant 0 : index
    %4 = vector.load %arg0[%c0_7, %c0_8] : memref<4x2048xbf16, #tpu.memory_space<vmem>>, vector<4x2048xbf16>
    %cst = arith.constant dense<0.000000e+00> : vector<4x32xf32>
    %5 = tpu.matmul %4, %0, %cst {dimension_numbers = #tpu.dot_dimension_numbers<[1], [0], [0], [1], [0, 0, 1, 1], [], []>} : vector<4x2048xbf16>, vector<2048x32xbf16>, vector<4x32xf32> -> vector<4x32xf32>
    %6 = vector.broadcast %2 : vector<1x32xf32> to vector<4x32xf32>
    %7 = arith.addf %5, %6 : vector<4x32xf32>
    %cst_9 = arith.constant 0.000000e+00 : f32
    %8 = vector.broadcast %cst_9 : f32 to vector<4x32xf32>
    %9 = arith.maximumf %7, %8 : vector<4x32xf32>
    %10 = arith.truncf %9 : vector<4x32xf32> to vector<4x32xbf16>
    %cst_10 = arith.constant dense<0.000000e+00> : vector<4x16xf32>
    %11 = tpu.matmul %10, %1, %cst_10 {dimension_numbers = #tpu.dot_dimension_numbers<[1], [0], [0], [1], [0, 0, 1, 1], [], []>} : vector<4x32xbf16>, vector<32x16xbf16>, vector<4x16xf32> -> vector<4x16xf32>
    %12 = vector.broadcast %3 : vector<1x16xf32> to vector<4x16xf32>
    %13 = arith.addf %11, %12 : vector<4x16xf32>
    %14 = arith.mulf %13, %13 : vector<4x16xf32>
    %cst_11 = arith.constant dense<0.000000e+00> : vector<4xf32>
    %15 = vector.multi_reduction <add>, %14, %cst_11 [1] : vector<4x16xf32> to vector<4xf32>
    %16 = vector.shape_cast %15 : vector<4xf32> to vector<4x1xf32>
    %cst_12 = arith.constant 1.000000e-24 : f32
    %17 = vector.broadcast %cst_12 : f32 to vector<4x1xf32>
    %18 = arith.maximumf %16, %17 : vector<4x1xf32>
    %19 = math.rsqrt %18 : vector<4x1xf32>
    %20 = vector.broadcast %19 : vector<4x1xf32> to vector<4x16xf32>
    %21 = arith.mulf %13, %20 : vector<4x16xf32>
    %c0_13 = arith.constant 0 : index
    %c0_14 = arith.constant 0 : index
    %22 = vector.load %arg1[%c0_13, %c0_14] : memref<4x2048xbf16, #tpu.memory_space<vmem>>, vector<4x2048xbf16>
    %cst_15 = arith.constant dense<0.000000e+00> : vector<4x32xf32>
    %23 = tpu.matmul %22, %0, %cst_15 {dimension_numbers = #tpu.dot_dimension_numbers<[1], [0], [0], [1], [0, 0, 1, 1], [], []>} : vector<4x2048xbf16>, vector<2048x32xbf16>, vector<4x32xf32> -> vector<4x32xf32>
    %24 = vector.broadcast %2 : vector<1x32xf32> to vector<4x32xf32>
    %25 = arith.addf %23, %24 : vector<4x32xf32>
    %cst_16 = arith.constant 0.000000e+00 : f32
    %26 = vector.broadcast %cst_16 : f32 to vector<4x32xf32>
    %27 = arith.maximumf %25, %26 : vector<4x32xf32>
    %28 = arith.truncf %27 : vector<4x32xf32> to vector<4x32xbf16>
    %cst_17 = arith.constant dense<0.000000e+00> : vector<4x16xf32>
    %29 = tpu.matmul %28, %1, %cst_17 {dimension_numbers = #tpu.dot_dimension_numbers<[1], [0], [0], [1], [0, 0, 1, 1], [], []>} : vector<4x32xbf16>, vector<32x16xbf16>, vector<4x16xf32> -> vector<4x16xf32>
    %30 = vector.broadcast %3 : vector<1x16xf32> to vector<4x16xf32>
    %31 = arith.addf %29, %30 : vector<4x16xf32>
    %32 = arith.mulf %31, %31 : vector<4x16xf32>
    %cst_18 = arith.constant dense<0.000000e+00> : vector<4xf32>
    %33 = vector.multi_reduction <add>, %32, %cst_18 [1] : vector<4x16xf32> to vector<4xf32>
    %34 = vector.shape_cast %33 : vector<4xf32> to vector<4x1xf32>
    %cst_19 = arith.constant 1.000000e-24 : f32
    %35 = vector.broadcast %cst_19 : f32 to vector<4x1xf32>
    %36 = arith.maximumf %34, %35 : vector<4x1xf32>
    %37 = math.rsqrt %36 : vector<4x1xf32>
    %38 = vector.broadcast %37 : vector<4x1xf32> to vector<4x16xf32>
    %39 = arith.mulf %31, %38 : vector<4x16xf32>
    %cst_20 = arith.constant 2.000000e+00 : f32
    %40 = vector.broadcast %cst_20 : f32 to vector<4x16xf32>
    %41 = arith.mulf %21, %40 : vector<4x16xf32>
    %c0_21 = arith.constant 0 : index
    %c0_22 = arith.constant 0 : index
    %42 = vector.load %arg8[%c0_21, %c0_22] : memref<8x16xf32, #tpu.memory_space<vmem>>, vector<4x16xf32>
    tpu.vector_store %arg8[%c0_21, %c0_22], %41 {strides = array<i32>} : memref<8x16xf32, #tpu.memory_space<vmem>>, vector<4x16xf32>,
    %cst_23 = arith.constant 2.000000e+00 : f32
    %43 = vector.broadcast %cst_23 : f32 to vector<4x16xf32>
    %44 = arith.mulf %39, %43 : vector<4x16xf32>
    %c4 = arith.constant 4 : index
    %c0_24 = arith.constant 0 : index
    %45 = vector.load %arg8[%c4, %c0_24] : memref<8x16xf32, #tpu.memory_space<vmem>>, vector<4x16xf32>
    tpu.vector_store %arg8[%c4, %c0_24], %44 {strides = array<i32>} : memref<8x16xf32, #tpu.memory_space<vmem>>, vector<4x16xf32>,
    %c0_25 = arith.constant 0 : index
    %c0_26 = arith.constant 0 : index
    %46 = vector.load %arg9[%c0_25, %c0_26] : memref<8x16xf32, #tpu.memory_space<vmem>>, vector<4x16xf32>
    tpu.vector_store %arg9[%c0_25, %c0_26], %39 {strides = array<i32>} : memref<8x16xf32, #tpu.memory_space<vmem>>, vector<4x16xf32>,
    %c4_27 = arith.constant 4 : index
    %c0_28 = arith.constant 0 : index
    %47 = vector.load %arg9[%c4_27, %c0_28] : memref<8x16xf32, #tpu.memory_space<vmem>>, vector<4x16xf32>
    tpu.vector_store %arg9[%c4_27, %c0_28], %21 {strides = array<i32>} : memref<8x16xf32, #tpu.memory_space<vmem>>, vector<4x16xf32>,
    %c0_29 = arith.constant 0 : index
    %c0_30 = arith.constant 0 : index
    %48 = vector.load %arg8[%c0_29, %c0_30] : memref<8x16xf32, #tpu.memory_space<vmem>>, vector<8x16xf32>
    %49 = arith.truncf %48 : vector<8x16xf32> to vector<8x16xbf16>
    %c0_31 = arith.constant 0 : index
    %c0_32 = arith.constant 0 : index
    %50 = vector.load %arg9[%c0_31, %c0_32] : memref<8x16xf32, #tpu.memory_space<vmem>>, vector<8x16xf32>
    %51 = arith.truncf %50 : vector<8x16xf32> to vector<8x16xbf16>
    %cst_33 = arith.constant dense<0.000000e+00> : vector<8x8xf32>
    %52 = tpu.matmul %49, %51, %cst_33 {dimension_numbers = #tpu.dot_dimension_numbers<[1], [1], [0], [0], [0, 0, 1, 0], [], []>} : vector<8x16xbf16>, vector<8x16xbf16>, vector<8x8xf32> -> vector<8x8xf32>
    %53 = tpu.iota {dimensions = array<i32: 0>} : vector<8x8xi32>
    %54 = tpu.iota {dimensions = array<i32: 1>} : vector<8x8xi32>
    %55 = arith.subi %53, %54 : vector<8x8xi32>
    %56 = math.absi %55 : vector<8x8xi32>
    %c4_i32 = arith.constant 4 : i32
    %57 = vector.broadcast %c4_i32 : i32 to vector<8x8xi32>
    %58 = arith.cmpi eq, %56, %57 : vector<8x8xi32>
    %cst_34 = arith.constant -1.000000e+06 : f32
    %59 = vector.broadcast %cst_34 : f32 to vector<8x8xf32>
    %60 = arith.select %58, %59, %52 : vector<8x8xi1>, vector<8x8xf32>
    %c0_35 = arith.constant 0 : index
    %c0_36 = arith.constant 0 : index
    %61 = vector.load %arg6[%c0_35, %c0_36] : memref<8x8xf32, #tpu.memory_space<vmem>>, vector<8x8xf32>
    tpu.vector_store %arg6[%c0_35, %c0_36], %60 {strides = array<i32>} : memref<8x8xf32, #tpu.memory_space<vmem>>, vector<8x8xf32>,
    %cst_37 = arith.constant dense<0xFF800000> : vector<8xf32>
    %62 = vector.multi_reduction <maximumf>, %60, %cst_37 [1] : vector<8x8xf32> to vector<8xf32>
    %63 = vector.shape_cast %62 : vector<8xf32> to vector<8x1xf32>
    %64 = vector.broadcast %63 : vector<8x1xf32> to vector<8x8xf32>
    %65 = arith.subf %60, %64 : vector<8x8xf32>
    %66 = math.exp %65 : vector<8x8xf32>
    %cst_38 = arith.constant dense<0.000000e+00> : vector<8xf32>
    %67 = vector.multi_reduction <add>, %66, %cst_38 [1] : vector<8x8xf32> to vector<8xf32>
    %68 = vector.shape_cast %67 : vector<8xf32> to vector<8x1xf32>
    %69 = math.log %68 : vector<8x1xf32>
    %70 = arith.addf %63, %69 : vector<8x1xf32>
    %cst_39 = arith.constant dense<0.000000e+00> : vector<1xf32>
    %71 = vector.multi_reduction <add>, %70, %cst_39 [0] : vector<8x1xf32> to vector<1xf32>
    %72 = vector.shape_cast %71 : vector<1xf32> to vector<1x1xf32>
    %73 = arith.mulf %21, %39 : vector<4x16xf32>
    %74 = vector.shape_cast %73 : vector<4x16xf32> to vector<1x4x16xf32>
    %cst_40 = arith.constant dense<0.000000e+00> : vector<1xf32>
    %75 = vector.multi_reduction <add>, %74, %cst_40 [1, 2] : vector<1x4x16xf32> to vector<1xf32>
    %76 = vector.shape_cast %75 : vector<1xf32> to vector<1x1x1xf32>
    %77 = vector.extract %76[0, 0, 0] : f32 from vector<1x1x1xf32>
    %78 = vector.broadcast %77 : f32 to vector<1x1xf32>
    %cst_41 = arith.constant 4.000000e+00 : f32
    %79 = vector.broadcast %cst_41 : f32 to vector<1x1xf32>
    %80 = arith.mulf %79, %78 : vector<1x1xf32>
    %81 = arith.subf %72, %80 : vector<1x1xf32>
    %cst_42 = arith.constant 8.000000e+00 : f32
    %82 = vector.broadcast %cst_42 : f32 to vector<1x1xf32>
    %83 = arith.divf %81, %82 : vector<1x1xf32>
    %c0_43 = arith.constant 0 : index
    %c0_44 = arith.constant 0 : index
    %84 = vector.load %arg7[%c0_43, %c0_44] : memref<1x1xf32, #tpu.memory_space<vmem>>, vector<1x1xf32>
    tpu.vector_store %arg7[%c0_43, %c0_44], %83 {strides = array<i32>} : memref<1x1xf32, #tpu.memory_space<vmem>>, vector<1x1xf32>,
    return
  }
}

</mosaic_0001>

<bundles_post_ra>
// kernel: tpu_custom_call.1
= control target key start
LH: loop header
LB: loop body
LE: loop exit
PB: predicated region body
PF: predicated region fallthrough
CT: control target
= control target key end

     0   :  { %13 = vsyncpa [#allocation5], 0  ;;  %s3532_s0 = inlined_call_operand.vmem [shape: bf16[4,2048], index: 0, kind: input, shape index: {}]   ;;  %s3533_s1 = inlined_call_operand.vmem [shape: bf16[4,2048], index: 1, kind: input, shape index: {}]   ;;  %s3534_s2 = inlined_call_operand.vmem [shape: bf16[2048,32], index: 2, kind: input, shape index: {}]   ;;  %s3535_s3 = inlined_call_operand.vmem [shape: f32[1,32], index: 3, kind: input, shape index: {}]   ;;  %s3536_s4 = inlined_call_operand.vmem [shape: bf16[32,16], index: 4, kind: input, shape index: {}]   ;;  %s3537_s5 = inlined_call_operand.vmem [shape: f32[1,16], index: 5, kind: input, shape index: {}]   ;;  %s3538_s6 = inlined_call_operand.hbm [shape: f32[8,8], index: 6, kind: output, shape index: {0}]   ;;  %s3539_s7 = inlined_call_operand.hbm [shape: f32[1,1], index: 7, kind: output, shape index: {1}]  }
   0x1   :  { %v2536_v0 = vld [vmem:[%s3534_s2 + $0x38] sm:$0xff]  ;;  %v2558_v4 = vld [vmem:[%s3534_s2 + $0x30] sm:$0xff]  ;;  %v2582_v8 = vld [vmem:[%s3534_s2 + $0x28] sm:$0xff] }
   0x2   :  { %v2541_v1 = vld [vmem:[%s3534_s2 + $0x78] sm:$0xff]  ;;  %1106 = vmatpush.bf16.msra.mxu0 %v2536_v0  ;;  %v2563_v5 = vld [vmem:[%s3534_s2 + $0x70] sm:$0xff]  ;;  %v2587_v9 = vld [vmem:[%s3534_s2 + $0x68] sm:$0xff] }
   0x3   :  { %v2546_v2 = vld [vmem:[%s3534_s2 + $0xb8] sm:$0xff]  ;;  %1119 = vmatpush.bf16.msra.mxu1 %v2541_v1  ;;  %v2570_v6 = vld [vmem:[%s3534_s2 + $0xb0] sm:$0xff]  ;;  %v2594_v10 = vld [vmem:[%s3534_s2 + $0xa8] sm:$0xff] }
   0x4   :  { %v2551_v3 = vld [vmem:[%s3534_s2 + $0xf8] sm:$0xff]  ;;  %1132 = vmatpush.bf16.msra.mxu2 %v2546_v2  ;;  %v2575_v7 = vld [vmem:[%s3534_s2 + $0xf0] sm:$0xff]  ;;  %v2599_v11 = vld [vmem:[%s3534_s2 + $0xe8] sm:$0xff] }
   0x5   :  { %3608 = vst [vmem:[#allocation10_spill] sm:$0xff] %v2551_v3  ;;  %1145 = vmatpush.bf16.msra.mxu3 %v2551_v3  ;;  %v2606_v12 = vld [vmem:[%s3534_s2 + $0x20] sm:$0xff]  ;;  %v2630_v16 = vld [vmem:[%s3534_s2 + $0x18] sm:$0xff]  ;;  %v2652_v20 = vld [vmem:[%s3534_s2 + $0x10] sm:$0xff] }
   0x6   :  { %3609 = vst [vmem:[#allocation11_spill] sm:$0xff] %v2575_v7  ;;  %1107 = vmatpush.bf16.msra.mxu0 %v2558_v4  ;;  %v2611_v13 = vld [vmem:[%s3534_s2 + $0x60] sm:$0xff]  ;;  %v2635_v17 = vld [vmem:[%s3534_s2 + $0x58] sm:$0xff]  ;;  %v2657_v21 = vld [vmem:[%s3534_s2 + $0x50] sm:$0xff] }
   0x7   :  { %1120 = vmatpush.bf16.msra.mxu1 %v2563_v5  ;;  %3610 = vst [vmem:[#allocation12_spill] sm:$0xff] %v2599_v11  ;;  %v2618_v14 = vld [vmem:[%s3534_s2 + $0xa0] sm:$0xff]  ;;  %v2642_v18 = vld [vmem:[%s3534_s2 + $0x98] sm:$0xff]  ;;  %v2669_v23 = vld [vmem:[%s3534_s2 + $0x90] sm:$0xff] }
   0x8   :  { %1133 = vmatpush.bf16.msra.mxu2 %v2570_v6  ;;  %v2623_v15 = vld [vmem:[%s3534_s2 + $0xe0] sm:$0xff]  ;;  %v2647_v19 = vld [vmem:[%s3534_s2 + $0xd8] sm:$0xff]  ;;  %v2674_v24 = vld [vmem:[%s3534_s2 + $0xd0] sm:$0xff] }
   0x9   :  { %1146 = vmatpush.bf16.msra.mxu3 %v2575_v7  ;;  %3611 = vst [vmem:[#allocation13_spill] sm:$0xff] %v2623_v15  ;;  %v290_v22 = vld [vmem:[%s3532_s0] sm:$0xff] }
   0xa   :  { %1108 = vmatpush.bf16.msra.mxu0 %v2582_v8  ;;  %3612 = vst [vmem:[#allocation14_spill] sm:$0xff] %v2647_v19 }
   0xb   :  { %1121 = vmatpush.bf16.msra.mxu1 %v2587_v9  ;;  %298 = vst [vmem:[#allocation1] ss:$4 sm:$0xff] %v290_v22 }
   0xc   :  { %1134 = vmatpush.bf16.msra.mxu2 %v2594_v10  ;;  %3613 = vst [vmem:[#allocation15_spill] sm:$0xff] %v2674_v24 }
   0xd   :  { %1147 = vmatpush.bf16.msra.mxu3 %v2599_v11 }
   0xe   :  { %1109 = vmatpush.bf16.msra.mxu0 %v2606_v12 }
   0xf   :  { %1122 = vmatpush.bf16.msra.mxu1 %v2611_v13 }
  0x10   :  { %1135 = vmatpush.bf16.msra.mxu2 %v2618_v14 }
  0x11   :  { %1148 = vmatpush.bf16.msra.mxu3 %v2623_v15 }
  0x12   :  { %1110 = vmatpush.bf16.msra.mxu0 %v2630_v16 }
  0x13   :  { %1123 = vmatpush.bf16.msra.mxu1 %v2635_v17 }
  0x14   :  { %1136 = vmatpush.bf16.msra.mxu2 %v2642_v18 }
  0x15   :  { %1149 = vmatpush.bf16.msra.mxu3 %v2647_v19 }
  0x16   :  { %14 = vsyncpa [#allocation7], 0  ;;  %1111 = vmatpush.bf16.msra.mxu0 %v2652_v20  ;;  %v2681_v25 = vld [vmem:[%s3534_s2 + $0x8] sm:$0xff]  ;;  %v2703_v29 = vld [vmem:[%s3534_s2] sm:$0xff]  ;;  %vm1331_vm0 = vcmask 261120   ;;  %vm1349_vm1 = vcmask 125952  }
  0x17   :  { %1124 = vmatpush.bf16.msra.mxu1 %v2657_v21  ;;  %v2686_v26 = vld [vmem:[%s3534_s2 + $0x48] sm:$0xff]  ;;  %v2708_v30 = vld [vmem:[%s3534_s2 + $0x40] sm:$0xff]  ;;  %v304_v32 = vld.sshfl [vmem:[#allocation1 + $0x10] sm:$0xff pattern:$0x73625140]  ;;  %vm1662_vm8 = vcmask 130048  }
  0x18   :  { %1137 = vmatpush.bf16.msra.mxu2 %v2669_v23  ;;  %v2693_v27 = vld [vmem:[%s3534_s2 + $0x88] sm:$0xff]  ;;  %v2713_v31 = vld [vmem:[%s3534_s2 + $0x80] sm:$0xff]  ;;  %v292_v35 = vld [vmem:[%s3532_s0 + $0x10] sm:$0xff]  ;;  %vm1692_vm11 = vcmask 64512   ;;  %s1743_s17 = sshll.u32 %s3538_s6, 4  ;;  %s2490_s18 = smov [#allocation4]   ;;  %s1744_s17 = int_to_ptr.hbm [resolvable:$true] %s1743_s17 }
  0x19   :  { %1150 = vmatpush.bf16.msra.mxu3 %v2674_v24  ;;  %v2698_v28 = vld [vmem:[%s3534_s2 + $0xc8] sm:$0xff]  ;;  %v2720_v33 = vld [vmem:[%s3534_s2 + $0xc0] sm:$0xff]  ;;  %v305_v36 = vld.sshfl [vmem:[#allocation1 + $0x18] sm:$0xff pattern:$0x73625140]  ;;  %s1741_s19 = sshll.u32 %s2490_s18, 4  ;;  %s1742_s19 = int_to_ptr.vmem [resolvable:$true] %s1741_s19 }
  0x1a   :  { %3614 = vst [vmem:[#allocation16_spill] sm:$0xff] %v2698_v28  ;;  %1112 = vmatpush.bf16.msra.mxu0 %v2681_v25  ;;  %v302_v34 = vld.sshfl [vmem:[#allocation1] sm:$0xff pattern:$0x73625140]  ;;  %v2730_v38 = vld [vmem:[%s3534_s2 + $0x138] sm:$0xff]  ;;  %v291_v42 = vld [vmem:[%s3532_s0 + $0x8] sm:$0xff] }
  0x1b   :  { %1125 = vmatpush.bf16.msra.mxu1 %v2686_v26  ;;  %3615 = vst [vmem:[#allocation17_spill] sm:$0xff] %v2720_v33  ;;  %v303_v37 = vld.sshfl [vmem:[#allocation1 + $0x8] sm:$0xff pattern:$0x73625140]  ;;  %v2735_v39 = vld [vmem:[%s3534_s2 + $0x178] sm:$0xff]  ;;  %v2759_v43 = vld [vmem:[%s3534_s2 + $0x130] sm:$0xff] }
  0x1c   :  { %1138 = vmatpush.bf16.msra.mxu2 %v2693_v27  ;;  %311 = vst [vmem:[#allocation1] ss:$4 sm:$0xff] %v292_v35  ;;  %v2740_v40 = vld [vmem:[%s3534_s2 + $0x1b8] sm:$0xff]  ;;  %v2764_v44 = vld [vmem:[%s3534_s2 + $0x170] sm:$0xff]  ;;  %v2783_v47 = vld [vmem:[%s3534_s2 + $0x128] sm:$0xff]  ;;  %s2492_s20 = smov [#allocation6]  }
  0x1d   :  { %1151 = vmatpush.bf16.msra.mxu3 %v2698_v28  ;;  %v2745_v41 = vld [vmem:[%s3534_s2 + $0x1f8] sm:$0xff]  ;;  %301 = vst [vmem:[#allocation1 + $0x20] ss:$4 sm:$0xff] %v291_v42  ;;  %v2771_v45 = vld [vmem:[%s3534_s2 + $0x1b0] sm:$0xff]  ;;  %v2788_v48 = vld [vmem:[%s3534_s2 + $0x168] sm:$0xff]  ;;  %s1752_s21 = sshll.u32 %s2492_s20, 4  ;;  %s1753_s21 = int_to_ptr.vmem [resolvable:$true] %s1752_s21 }
  0x1e   :  { %3616 = vst [vmem:[#allocation18_spill] sm:$0xff] %v2745_v41  ;;  %1113 = vmatpush.bf16.msra.mxu0 %v2703_v29  ;;  %v2776_v46 = vld [vmem:[%s3534_s2 + $0x1f0] sm:$0xff]  ;;  %v2795_v49 = vld [vmem:[%s3534_s2 + $0x1a8] sm:$0xff]  ;;  %v2805_v51 = vld [vmem:[%s3534_s2 + $0x120] sm:$0xff]  ;;  %s1754_s24 = sshll.u32 %s3539_s7, 4  ;;  %vm1734_vm13 = vcmask 0   ;;  %s1755_s24 = int_to_ptr.hbm [resolvable:$true] %s1754_s24 }
  0x1f   :  { %1126 = vmatpush.bf16.msra.mxu1 %v2708_v30  ;;  %3617 = vst [vmem:[#allocation19_spill] sm:$0xff] %v2776_v46  ;;  %v2800_v50 = vld [vmem:[%s3534_s2 + $0x1e8] sm:$0xff]  ;;  %v2818_v55 = vld [vmem:[%s3534_s2 + $0x160] sm:$0xff]  ;;  %v293_v56 = vld [vmem:[%s3532_s0 + $0x18] sm:$0xff] }
  0x20   :  { %1139 = vmatpush.bf16.msra.mxu2 %v2713_v31  ;;  %3618 = vst [vmem:[#allocation20_spill] sm:$0xff] %v2800_v50  ;;  %v2828_v58 = vld [vmem:[%s3534_s2 + $0x1a0] sm:$0xff]  ;;  %v2840_v60 = vld [vmem:[%s3534_s2 + $0x118] sm:$0xff]  ;;  %v2864_v22 = vld [vmem:[%s3534_s2 + $0x110] sm:$0xff] }
  0x21   :  { %1152 = vmatpush.bf16.msra.mxu3 %v2720_v33  ;;  %1114 = vmatmul.bf16.vlgmr.msra.gmra.mxu0 %v302_v34  ;;  %v2833_v59 = vld [vmem:[%s3534_s2 + $0x1e0] sm:$0xff]  ;;  %v2845_v61 = vld [vmem:[%s3534_s2 + $0x158] sm:$0xff]  ;;  %v2876_v34 = vld [vmem:[%s3534_s2 + $0x190] sm:$0xff] }
  0x22   :  { %1158 = vmatpush.bf16.msrb.mxu0 %v2730_v38  ;;  %1127 = vmatmul.bf16.vlgmr.msra.gmra.mxu1 %v303_v37  ;;  %3619 = vst [vmem:[#allocation21_spill] sm:$0xff] %v2833_v59  ;;  %v2852_v62 = vld [vmem:[%s3534_s2 + $0x198] sm:$0xff]  ;;  %v2881_v35 = vld [vmem:[%s3534_s2 + $0x1d0] sm:$0xff]  ;;  %v2893_v37 = vld [vmem:[%s3534_s2 + $0x148] sm:$0xff] }
  0x23   :  { %1171 = vmatpush.bf16.msrb.mxu1 %v2735_v39  ;;  %1140 = vmatmul.bf16.vlgmr.msra.gmra.mxu2 %v304_v32  ;;  %v2857_v63 = vld [vmem:[%s3534_s2 + $0x1d8] sm:$0xff]  ;;  %v2869_v32 = vld [vmem:[%s3534_s2 + $0x150] sm:$0xff]  ;;  %3621 = vst [vmem:[#allocation23_spill] sm:$0xff] %v2881_v35  ;;  %v2900_v42 = vld [vmem:[%s3534_s2 + $0x188] sm:$0xff] }
  0x24   :  { %1184 = vmatpush.bf16.msrb.mxu2 %v2740_v40  ;;  %1153 = vmatmul.bf16.vlgmr.msra.gmra.mxu3 %v305_v36  ;;  %v2807_v52 = vld.sshfl [vmem:[#allocation1 + $0x30] sm:$0xff pattern:$0x73625140]  ;;  %v2809_v53 = vld.sshfl [vmem:[#allocation1 + $0x20] sm:$0xff pattern:$0x73625140] }
  0x25   :  { %1197 = vmatpush.bf16.msrb.mxu3 %v2745_v41  ;;  %v2811_v54 = vld.sshfl [vmem:[#allocation1 + $0x38] sm:$0xff pattern:$0x73625140]  ;;  %v307_v57 = vld.sshfl [vmem:[#allocation1 + $0x28] sm:$0xff pattern:$0x73625140] }
  0x26   :  { %1159 = vmatpush.bf16.msrb.mxu0 %v2759_v43  ;;  %313 = vst [vmem:[#allocation1 + $0x20] ss:$4 sm:$0xff] %v293_v56  ;;  %v2888_v36 = vld [vmem:[%s3534_s2 + $0x108] sm:$0xff]  ;;  %v2939_v41 = vld [vmem:[%s3534_s2 + $0x278] sm:$0xff]  ;;  %v2956_v28 = vld [vmem:[%s3534_s2 + $0x230] sm:$0xff] }
  0x27   :  { %1172 = vmatpush.bf16.msrb.mxu1 %v2764_v44  ;;  %3620 = vst [vmem:[#allocation22_spill] sm:$0xff] %v2857_v63  ;;  %v2905_v56 = vld [vmem:[%s3534_s2 + $0x1c8] sm:$0xff]  ;;  %v2949_v33 = vld [vmem:[%s3534_s2 + $0x2f8] sm:$0xff]  ;;  %v2963_v24 = vld [vmem:[%s3534_s2 + $0x270] sm:$0xff] }
  0x28   :  { %1185 = vmatpush.bf16.msrb.mxu2 %v2771_v45  ;;  %3622 = vst [vmem:[#allocation24_spill] sm:$0xff] %v2905_v56  ;;  %v2968_v19 = vld [vmem:[%s3534_s2 + $0x2b0] sm:$0xff]  ;;  %v2970_v15 = vld.sshfl [vmem:[#allocation1] sm:$0xff pattern:$0x73625140] }
  0x29   :  { %1198 = vmatpush.bf16.msrb.mxu3 %v2776_v46  ;;  %v2934_v46 = vld [vmem:[%s3534_s2 + $0x238] sm:$0xff]  ;;  %3625 = vst [vmem:[#allocation27_spill] sm:$0xff] %v2939_v41  ;;  %v2974_v11 = vld.sshfl [vmem:[#allocation1 + $0x10] sm:$0xff pattern:$0x73625140] }
  0x2a   :  { %1160 = vmatpush.bf16.msrb.mxu0 %v2783_v47  ;;  %3624 = vst [vmem:[#allocation26_spill] sm:$0xff] %v2934_v46  ;;  %v2976_v7 = vld.sshfl [vmem:[#allocation1 + $0x8] sm:$0xff pattern:$0x73625140] }
  0x2b   :  { %1173 = vmatpush.bf16.msrb.mxu1 %v2788_v48  ;;  %3627 = vst [vmem:[#allocation29_spill] sm:$0xff] %v2949_v33  ;;  %v2985_v3 = vld.sshfl [vmem:[#allocation1 + $0x18] sm:$0xff pattern:$0x73625140] }
  0x2c   :  { %1186 = vmatpush.bf16.msrb.mxu2 %v2795_v49  ;;  %3628 = vst [vmem:[#allocation30_spill] sm:$0xff] %v2956_v28 }
  0x2d   :  { %1199 = vmatpush.bf16.msrb.mxu3 %v2800_v50  ;;  %v2929_v50 = vld [vmem:[%s3534_s2 + $0x1c0] sm:$0xff]  ;;  %3629 = vst [vmem:[#allocation31_spill] sm:$0xff] %v2963_v24 }
  0x2e   :  { %1161 = vmatpush.bf16.msrb.mxu0 %v2805_v51  ;;  %3623 = vst [vmem:[#allocation25_spill] sm:$0xff] %v2929_v50 }
  0x2f   :  { %1174 = vmatpush.bf16.msrb.mxu1 %v2818_v55  ;;  %3630 = vst [vmem:[#allocation32_spill] sm:$0xff] %v2968_v19 }
  0x30   :  { %1187 = vmatpush.bf16.msrb.mxu2 %v2828_v58 }
  0x31   :  { %1200 = vmatpush.bf16.msrb.mxu3 %v2833_v59  ;;  %v2924_v59 = vld [vmem:[%s3534_s2 + $0x180] sm:$0xff] }
  0x32   :  { %1162 = vmatpush.bf16.msrb.mxu0 %v2840_v60 }
  0x33   :  { %1175 = vmatpush.bf16.msrb.mxu1 %v2845_v61 }
  0x34   :  { %1188 = vmatpush.bf16.msrb.mxu2 %v2852_v62 }
  0x35   :  { %1201 = vmatpush.bf16.msrb.mxu3 %v2857_v63  ;;  %v2912_v63 = vld [vmem:[%s3534_s2 + $0x100] sm:$0xff] }
  0x36   :  { %1163 = vmatpush.bf16.msrb.mxu0 %v2864_v22 }
  0x37   :  { %1176 = vmatpush.bf16.msrb.mxu1 %v2869_v32 }
  0x38   :  { %1189 = vmatpush.bf16.msrb.mxu2 %v2876_v34 }
  0x39   :  { %1202 = vmatpush.bf16.msrb.mxu3 %v2881_v35  ;;  %v2917_v35 = vld [vmem:[%s3534_s2 + $0x140] sm:$0xff] }
  0x3a   :  { %1164 = vmatpush.bf16.msrb.mxu0 %v2888_v36 }
  0x3b   :  { %1177 = vmatpush.bf16.msrb.mxu1 %v2893_v37 }
  0x3c   :  { %1190 = vmatpush.bf16.msrb.mxu2 %v2900_v42 }
  0x3d   :  { %1203 = vmatpush.bf16.msrb.mxu3 %v2905_v56  ;;  %v2944_v56 = vld [vmem:[%s3534_s2 + $0x2b8] sm:$0xff] }
  0x3e   :  { %3626 = vst [vmem:[#allocation28_spill] sm:$0xff] %v2944_v56  ;;  %1165 = vmatpush.bf16.msrb.mxu0 %v2912_v63 }
  0x3f   :  { %1178 = vmatpush.bf16.msrb.mxu1 %v2917_v35 }
  0x40   :  { %1191 = vmatpush.bf16.msrb.mxu2 %v2924_v59 }
  0x41   :  { %1204 = vmatpush.bf16.msrb.mxu3 %v2929_v50  ;;  %v2983_v50 = vld [vmem:[%s3534_s2 + $0x2f0] sm:$0xff]  ;;  %1166 = vmatmul.bf16.vlgmr.msrb.gmra.mxu0 %v2809_v53  ;;  %v3022_v53 = vld [vmem:[%s3534_s2 + $0x220] sm:$0xff] }
  0x42   :  { %1210 = vmatpush.bf16.msra.mxu0 %v2934_v46  ;;  %3631 = vst [vmem:[#allocation33_spill] sm:$0xff] %v2983_v50  ;;  %v1365_v46 = vld [vmem:[%s3533_s1] sm:$0xff]  ;;  %1179 = vmatmul.bf16.vlgmr.msrb.gmra.mxu1 %v307_v57 }
  0x43   :  { %1223 = vmatpush.bf16.msra.mxu1 %v2939_v41  ;;  %1192 = vmatmul.bf16.vlgmr.msrb.gmra.mxu2 %v2807_v52  ;;  %1370 = vst [vmem:[#allocation1] ss:$4 sm:$0xff] %v1365_v46  ;;  %v3010_v46 = vld [vmem:[%s3534_s2 + $0x2a8] sm:$0xff]  ;;  %v3034_v57 = vld [vmem:[%s3534_s2 + $0x2a0] sm:$0xff] }
  0x44   :  { %1236 = vmatpush.bf16.msra.mxu2 %v2944_v56  ;;  %1205 = vmatmul.bf16.vlgmr.msrb.gmra.mxu3 %v2811_v54  ;;  %v3003_v56 = vld [vmem:[%s3534_s2 + $0x268] sm:$0xff]  ;;  %3634 = vst [vmem:[#allocation36_spill] sm:$0xff] %v3010_v46  ;;  %v3027_v54 = vld [vmem:[%s3534_s2 + $0x260] sm:$0xff]  ;;  %v3170_v41 = vld.sshfl [vmem:[#allocation1 + $0x30] sm:$0xff pattern:$0x73625140] }
  0x45   :  { %1249 = vmatpush.bf16.msra.mxu3 %v2949_v33  ;;  %v2998_v33 = vld [vmem:[%s3534_s2 + $0x228] sm:$0xff]  ;;  %3633 = vst [vmem:[#allocation35_spill] sm:$0xff] %v3003_v56 }
  0x46   :  { %1211 = vmatpush.bf16.msra.mxu0 %v2956_v28  ;;  %3632 = vst [vmem:[#allocation34_spill] sm:$0xff] %v2998_v33  ;;  %v3015_v52 = vld [vmem:[%s3534_s2 + $0x2e8] sm:$0xff]  ;;  %v3162_v28 = vld [vmem:[%s3534_s2 + $0x330] sm:$0xff] }
  0x47   :  { %1224 = vmatpush.bf16.msra.mxu1 %v2963_v24  ;;  %3635 = vst [vmem:[#allocation37_spill] sm:$0xff] %v3015_v52  ;;  %v3168_v24 = vld.sshfl [vmem:[#allocation1 + $0x28] sm:$0xff pattern:$0x73625140] }
  0x48   :  { %1237 = vmatpush.bf16.msra.mxu2 %v2968_v19  ;;  %3636 = vst [vmem:[#allocation38_spill] sm:$0xff] %v3022_v53  ;;  %v3164_v19 = vld.sshfl [vmem:[#allocation1 + $0x20] sm:$0xff pattern:$0x73625140] }
  0x49   :  { %1250 = vmatpush.bf16.msra.mxu3 %v2983_v50  ;;  %3637 = vst [vmem:[#allocation39_spill] sm:$0xff] %v3027_v54  ;;  %v3039_v50 = vld [vmem:[%s3534_s2 + $0x2e0] sm:$0xff] }
  0x4a   :  { %1212 = vmatpush.bf16.msra.mxu0 %v2998_v33  ;;  %3638 = vst [vmem:[#allocation40_spill] sm:$0xff] %v3034_v57  ;;  %v3046_v33 = vld [vmem:[%s3534_s2 + $0x218] sm:$0xff] }
  0x4b   :  { %1225 = vmatpush.bf16.msra.mxu1 %v3003_v56  ;;  %3639 = vst [vmem:[#allocation41_spill] sm:$0xff] %v3039_v50  ;;  %v3155_v56 = vld [vmem:[%s3534_s2 + $0x3f8] sm:$0xff] }
  0x4c   :  { %1238 = vmatpush.bf16.msra.mxu2 %v3010_v46  ;;  %3640 = vst [vmem:[#allocation42_spill] sm:$0xff] %v3046_v33  ;;  %v3140_v46 = vld [vmem:[%s3534_s2 + $0x338] sm:$0xff] }
  0x4d   :  { %1251 = vmatpush.bf16.msra.mxu3 %v3015_v52  ;;  %v3051_v52 = vld [vmem:[%s3534_s2 + $0x258] sm:$0xff]  ;;  %3656 = vst [vmem:[#allocation58_spill] sm:$0xff] %v3140_v46 }
  0x4e   :  { %1213 = vmatpush.bf16.msra.mxu0 %v3022_v53  ;;  %3641 = vst [vmem:[#allocation43_spill] sm:$0xff] %v3051_v52  ;;  %v3058_v53 = vld [vmem:[%s3534_s2 + $0x298] sm:$0xff] }
  0x4f   :  { %1226 = vmatpush.bf16.msra.mxu1 %v3027_v54  ;;  %3642 = vst [vmem:[#allocation44_spill] sm:$0xff] %v3058_v53  ;;  %v3063_v54 = vld [vmem:[%s3534_s2 + $0x2d8] sm:$0xff] }
  0x50   :  { %1239 = vmatpush.bf16.msra.mxu2 %v3034_v57  ;;  %3643 = vst [vmem:[#allocation45_spill] sm:$0xff] %v3063_v54  ;;  %v3070_v57 = vld [vmem:[%s3534_s2 + $0x210] sm:$0xff] }
  0x51   :  { %1252 = vmatpush.bf16.msra.mxu3 %v3039_v50  ;;  %3644 = vst [vmem:[#allocation46_spill] sm:$0xff] %v3070_v57  ;;  %v3075_v50 = vld [vmem:[%s3534_s2 + $0x250] sm:$0xff] }
  0x52   :  { %1214 = vmatpush.bf16.msra.mxu0 %v3046_v33  ;;  %3645 = vst [vmem:[#allocation47_spill] sm:$0xff] %v3075_v50  ;;  %v3082_v33 = vld [vmem:[%s3534_s2 + $0x290] sm:$0xff] }
  0x53   :  { %1227 = vmatpush.bf16.msra.mxu1 %v3051_v52  ;;  %3646 = vst [vmem:[#allocation48_spill] sm:$0xff] %v3082_v33  ;;  %v3087_v52 = vld [vmem:[%s3534_s2 + $0x2d0] sm:$0xff] }
  0x54   :  { %1240 = vmatpush.bf16.msra.mxu2 %v3058_v53  ;;  %3647 = vst [vmem:[#allocation49_spill] sm:$0xff] %v3087_v52  ;;  %v3094_v53 = vld [vmem:[%s3534_s2 + $0x208] sm:$0xff] }
  0x55   :  { %1253 = vmatpush.bf16.msra.mxu3 %v3063_v54  ;;  %3648 = vst [vmem:[#allocation50_spill] sm:$0xff] %v3094_v53  ;;  %v3099_v54 = vld [vmem:[%s3534_s2 + $0x248] sm:$0xff] }
  0x56   :  { %1215 = vmatpush.bf16.msra.mxu0 %v3070_v57  ;;  %3649 = vst [vmem:[#allocation51_spill] sm:$0xff] %v3099_v54  ;;  %v3106_v57 = vld [vmem:[%s3534_s2 + $0x288] sm:$0xff] }
  0x57   :  { %1228 = vmatpush.bf16.msra.mxu1 %v3075_v50  ;;  %3650 = vst [vmem:[#allocation52_spill] sm:$0xff] %v3106_v57  ;;  %v3111_v50 = vld [vmem:[%s3534_s2 + $0x2c8] sm:$0xff] }
  0x58   :  { %1241 = vmatpush.bf16.msra.mxu2 %v3082_v33  ;;  %3651 = vst [vmem:[#allocation53_spill] sm:$0xff] %v3111_v50  ;;  %v3118_v33 = vld [vmem:[%s3534_s2 + $0x200] sm:$0xff] }
  0x59   :  { %1254 = vmatpush.bf16.msra.mxu3 %v3087_v52  ;;  %3652 = vst [vmem:[#allocation54_spill] sm:$0xff] %v3118_v33  ;;  %v3123_v52 = vld [vmem:[%s3534_s2 + $0x240] sm:$0xff] }
  0x5a   :  { %1216 = vmatpush.bf16.msra.mxu0 %v3094_v53  ;;  %3653 = vst [vmem:[#allocation55_spill] sm:$0xff] %v3123_v52  ;;  %v3130_v53 = vld [vmem:[%s3534_s2 + $0x280] sm:$0xff] }
  0x5b   :  { %1229 = vmatpush.bf16.msra.mxu1 %v3099_v54  ;;  %3654 = vst [vmem:[#allocation56_spill] sm:$0xff] %v3130_v53  ;;  %v3135_v54 = vld [vmem:[%s3534_s2 + $0x2c0] sm:$0xff] }
  0x5c   :  { %1242 = vmatpush.bf16.msra.mxu2 %v3106_v57  ;;  %3655 = vst [vmem:[#allocation57_spill] sm:$0xff] %v3135_v54  ;;  %v3145_v57 = vld [vmem:[%s3534_s2 + $0x378] sm:$0xff] }
  0x5d   :  { %1255 = vmatpush.bf16.msra.mxu3 %v3111_v50  ;;  %v3150_v50 = vld [vmem:[%s3534_s2 + $0x3b8] sm:$0xff]  ;;  %3657 = vst [vmem:[#allocation59_spill] sm:$0xff] %v3155_v56 }
  0x5e   :  { %1217 = vmatpush.bf16.msra.mxu0 %v3118_v33  ;;  %v3177_v33 = vld [vmem:[%s3534_s2 + $0x370] sm:$0xff] }
  0x5f   :  { %1230 = vmatpush.bf16.msra.mxu1 %v3123_v52  ;;  %v3179_v52 = vld.sshfl [vmem:[#allocation1 + $0x38] sm:$0xff pattern:$0x73625140] }
  0x60   :  { %1243 = vmatpush.bf16.msra.mxu2 %v3130_v53  ;;  %v1366_v53 = vld [vmem:[%s3533_s1 + $0x8] sm:$0xff] }
  0x61   :  { %1256 = vmatpush.bf16.msra.mxu3 %v3135_v54  ;;  %v3189_v54 = vld [vmem:[%s3534_s2 + $0x3b0] sm:$0xff]  ;;  %1373 = vst [vmem:[#allocation1 + $0x20] ss:$4 sm:$0xff] %v1366_v53  ;;  %1218 = vmatmul.bf16.vlgmr.msra.gmra.mxu0 %v2970_v15  ;;  %v3210_v53 = vld [vmem:[%s3534_s2 + $0x368] sm:$0xff]  ;;  %v3234_v15 = vld [vmem:[%s3534_s2 + $0x360] sm:$0xff] }
  0x62   :  { %1262 = vmatpush.bf16.msrb.mxu0 %v3140_v46  ;;  %v3194_v46 = vld [vmem:[%s3534_s2 + $0x3f0] sm:$0xff]  ;;  %1231 = vmatmul.bf16.vlgmr.msra.gmra.mxu1 %v2976_v7  ;;  %v3222_v7 = vld [vmem:[%s3534_s2 + $0x3e8] sm:$0xff]  ;;  %3663 = vst [vmem:[#allocation65_spill] sm:$0xff] %v3234_v15 }
  0x63   :  { %1275 = vmatpush.bf16.msrb.mxu1 %v3145_v57  ;;  %3658 = vst [vmem:[#allocation60_spill] sm:$0xff] %v3194_v46  ;;  %1244 = vmatmul.bf16.vlgmr.msra.gmra.mxu2 %v2974_v11  ;;  %v3229_v11 = vld [vmem:[%s3534_s2 + $0x320] sm:$0xff] }
  0x64   :  { %1288 = vmatpush.bf16.msrb.mxu2 %v3150_v50  ;;  %1257 = vmatmul.bf16.vlgmr.msra.gmra.mxu3 %v2985_v3  ;;  %v3217_v3 = vld [vmem:[%s3534_s2 + $0x3a8] sm:$0xff]  ;;  %3661 = vst [vmem:[#allocation63_spill] sm:$0xff] %v3222_v7 }
  0x65   :  { %1301 = vmatpush.bf16.msrb.mxu3 %v3155_v56  ;;  %v3205_v56 = vld [vmem:[%s3534_s2 + $0x328] sm:$0xff]  ;;  %3660 = vst [vmem:[#allocation62_spill] sm:$0xff] %v3217_v3 }
  0x66   :  { %1263 = vmatpush.bf16.msrb.mxu0 %v3162_v28  ;;  %3659 = vst [vmem:[#allocation61_spill] sm:$0xff] %v3205_v56 }
  0x67   :  { %1276 = vmatpush.bf16.msrb.mxu1 %v3177_v33  ;;  %3662 = vst [vmem:[#allocation64_spill] sm:$0xff] %v3229_v11 }
  0x68   :  { %1289 = vmatpush.bf16.msrb.mxu2 %v3189_v54 }
  0x69   :  { %1302 = vmatpush.bf16.msrb.mxu3 %v3194_v46  ;;  %v3241_v46 = vld [vmem:[%s3534_s2 + $0x3a0] sm:$0xff] }
  0x6a   :  { %1264 = vmatpush.bf16.msrb.mxu0 %v3205_v56  ;;  %3664 = vst [vmem:[#allocation66_spill] sm:$0xff] %v3241_v46  ;;  %v3246_v56 = vld [vmem:[%s3534_s2 + $0x3e0] sm:$0xff] }
  0x6b   :  { %1277 = vmatpush.bf16.msrb.mxu1 %v3210_v53  ;;  %3665 = vst [vmem:[#allocation67_spill] sm:$0xff] %v3246_v56 }
  0x6c   :  { %1290 = vmatpush.bf16.msrb.mxu2 %v3217_v3  ;;  %v3253_v3 = vld [vmem:[%s3534_s2 + $0x318] sm:$0xff] }
  0x6d   :  { %1303 = vmatpush.bf16.msrb.mxu3 %v3222_v7  ;;  %3666 = vst [vmem:[#allocation68_spill] sm:$0xff] %v3253_v3  ;;  %v3258_v7 = vld [vmem:[%s3534_s2 + $0x358] sm:$0xff] }
  0x6e   :  { %1265 = vmatpush.bf16.msrb.mxu0 %v3229_v11  ;;  %3667 = vst [vmem:[#allocation69_spill] sm:$0xff] %v3258_v7  ;;  %v3265_v11 = vld [vmem:[%s3534_s2 + $0x398] sm:$0xff] }
  0x6f   :  { %1278 = vmatpush.bf16.msrb.mxu1 %v3234_v15  ;;  %3668 = vst [vmem:[#allocation70_spill] sm:$0xff] %v3265_v11  ;;  %v3270_v15 = vld [vmem:[%s3534_s2 + $0x3d8] sm:$0xff] }
  0x70   :  { %1291 = vmatpush.bf16.msrb.mxu2 %v3241_v46  ;;  %3669 = vst [vmem:[#allocation71_spill] sm:$0xff] %v3270_v15  ;;  %v3277_v46 = vld [vmem:[%s3534_s2 + $0x310] sm:$0xff] }
  0x71   :  { %1304 = vmatpush.bf16.msrb.mxu3 %v3246_v56  ;;  %3670 = vst [vmem:[#allocation72_spill] sm:$0xff] %v3277_v46  ;;  %v3282_v56 = vld [vmem:[%s3534_s2 + $0x350] sm:$0xff] }
  0x72   :  { %1266 = vmatpush.bf16.msrb.mxu0 %v3253_v3  ;;  %3671 = vst [vmem:[#allocation73_spill] sm:$0xff] %v3282_v56  ;;  %v3289_v3 = vld [vmem:[%s3534_s2 + $0x390] sm:$0xff] }
  0x73   :  { %1279 = vmatpush.bf16.msrb.mxu1 %v3258_v7  ;;  %3672 = vst [vmem:[#allocation74_spill] sm:$0xff] %v3289_v3  ;;  %v3294_v7 = vld [vmem:[%s3534_s2 + $0x3d0] sm:$0xff] }
  0x74   :  { %1292 = vmatpush.bf16.msrb.mxu2 %v3265_v11  ;;  %3673 = vst [vmem:[#allocation75_spill] sm:$0xff] %v3294_v7  ;;  %v3301_v11 = vld [vmem:[%s3534_s2 + $0x308] sm:$0xff] }
  0x75   :  { %1305 = vmatpush.bf16.msrb.mxu3 %v3270_v15  ;;  %3674 = vst [vmem:[#allocation76_spill] sm:$0xff] %v3301_v11  ;;  %v3306_v15 = vld [vmem:[%s3534_s2 + $0x348] sm:$0xff] }
  0x76   :  { %1267 = vmatpush.bf16.msrb.mxu0 %v3277_v46  ;;  %3675 = vst [vmem:[#allocation77_spill] sm:$0xff] %v3306_v15  ;;  %v3313_v46 = vld [vmem:[%s3534_s2 + $0x388] sm:$0xff] }
  0x77   :  { %1280 = vmatpush.bf16.msrb.mxu1 %v3282_v56  ;;  %v3318_v56 = vld [vmem:[%s3534_s2 + $0x3c8] sm:$0xff] }
  0x78   :  { %1293 = vmatpush.bf16.msrb.mxu2 %v3289_v3  ;;  %v3325_v3 = vld [vmem:[%s3534_s2 + $0x300] sm:$0xff] }
  0x79   :  { %1306 = vmatpush.bf16.msrb.mxu3 %v3294_v7  ;;  %v3330_v7 = vld [vmem:[%s3534_s2 + $0x340] sm:$0xff] }
  0x7a   :  { %1268 = vmatpush.bf16.msrb.mxu0 %v3301_v11  ;;  %v3337_v11 = vld [vmem:[%s3534_s2 + $0x380] sm:$0xff] }
  0x7b   :  { %1281 = vmatpush.bf16.msrb.mxu1 %v3306_v15  ;;  %v3342_v15 = vld [vmem:[%s3534_s2 + $0x3c0] sm:$0xff] }
  0x7c   :  { %1294 = vmatpush.bf16.msrb.mxu2 %v3313_v46 }
  0x7d   :  { %1307 = vmatpush.bf16.msrb.mxu3 %v3318_v56 }
  0x7e   :  { %1269 = vmatpush.bf16.msrb.mxu0 %v3325_v3 }
  0x7f   :  { %1282 = vmatpush.bf16.msrb.mxu1 %v3330_v7 }
  0x80   :  { %1295 = vmatpush.bf16.msrb.mxu2 %v3337_v11 }
  0x81   :  { %1308 = vmatpush.bf16.msrb.mxu3 %v3342_v15  ;;  %1270 = vmatmul.bf16.vlgmr.msrb.gmra.mxu0 %v3164_v19 }
  0x82   :  { %1283 = vmatmul.bf16.vlgmr.msrb.gmra.mxu1 %v3168_v24 }
  0x83   :  { %1296 = vmatmul.bf16.vlgmr.msrb.gmra.mxu2 %v3170_v41  ;;  %1410 = vmatpush.bf16.msra.mxu1 %v2536_v0  ;;  %v3384_v0 = vld [vmem:[%s3535_s3] ss:$0 sm:$0xff] }
  0x84   :  { %1423 = vmatpush.bf16.msra.mxu2 %v2541_v1  ;;  %1309 = vmatmul.bf16.vlgmr.msrb.gmra.mxu3 %v3179_v52 }
  0x85   :  { %1436 = vmatpush.bf16.msra.mxu3 %v2546_v2 }
  0x87   :  { %1411 = vmatpush.bf16.msra.mxu1 %v2558_v4 }
  0x88   :  { %1424 = vmatpush.bf16.msra.mxu2 %v2563_v5 }
  0x89   :  { %1437 = vmatpush.bf16.msra.mxu3 %v2570_v6 }
  0x8b   :  { %1412 = vmatpush.bf16.msra.mxu1 %v2582_v8 }
  0x8c   :  { %1425 = vmatpush.bf16.msra.mxu2 %v2587_v9 }
  0x8d   :  { %1438 = vmatpush.bf16.msra.mxu3 %v2594_v10 }
  0x8f   :  { %1413 = vmatpush.bf16.msra.mxu1 %v2606_v12 }
  0x90   :  { %1426 = vmatpush.bf16.msra.mxu2 %v2611_v13 }
  0x91   :  { %1439 = vmatpush.bf16.msra.mxu3 %v2618_v14 }
  0x93   :  { %1414 = vmatpush.bf16.msra.mxu1 %v2630_v16 }
  0x94   :  { %1427 = vmatpush.bf16.msra.mxu2 %v2635_v17 }
  0x95   :  { %1440 = vmatpush.bf16.msra.mxu3 %v2642_v18 }
  0x97   :  { %1415 = vmatpush.bf16.msra.mxu1 %v2652_v20 }
  0x98   :  { %1428 = vmatpush.bf16.msra.mxu2 %v2657_v21  ;;  %v3409_v21 = vld [vmem:[%s3536_s4 + $0x8] sm:$0xff] }
  0x99   :  { %1441 = vmatpush.bf16.msra.mxu3 %v2669_v23  ;;  %1341 = vmatpush.bf16.msra.mxu0 %v3409_v21 }
  0x9b   :  { %1416 = vmatpush.bf16.msra.mxu1 %v2681_v25  ;;  %v3415_v25 = vld [vmem:[%s3536_s4] sm:$0xff] }
  0x9c   :  { %1429 = vmatpush.bf16.msra.mxu2 %v2686_v26 }
  0x9d   :  { %1442 = vmatpush.bf16.msra.mxu3 %v2693_v27  ;;  %1342 = vmatpush.bf16.msra.mxu0 %v3415_v25  ;;  %v3676_v27 = vld [vmem:[#allocation10_spill] sm:$0xff] }
  0x9e   :  { %v1115_v1 = vpop.f32.mrf.mxu0 }
  0x9f   :  { %1417 = vmatpush.bf16.msra.mxu1 %v2703_v29  ;;  %v1116_v2 = vadd.f32 %v3384_v0, %v1115_v1  ;;  %v1128_v4 = vpop.f32.mrf.mxu1  ;;  %v3689_v1 = vld [vmem:[#allocation30_spill] sm:$0xff] }
  0xa0   :  { %1430 = vmatpush.bf16.msra.mxu2 %v2708_v30  ;;  %v3677_v30 = vld [vmem:[#allocation11_spill] sm:$0xff] }
  0xa1   :  { %1443 = vmatpush.bf16.msra.mxu3 %v2713_v31  ;;  %v1129_v5 = vadd.f32 %v1128_v4, %v1116_v2  ;;  %1449 = vmatpush.bf16.msrb.mxu0 %v3676_v27  ;;  %v3678_v31 = vld [vmem:[#allocation12_spill] sm:$0xff]  ;;  %v3690_v2 = vld [vmem:[#allocation35_spill] sm:$0xff] }
  0xa2   :  { %v3691_v4 = vld [vmem:[#allocation36_spill] sm:$0xff] }
  0xa3   :  { %1462 = vmatpush.bf16.msrb.mxu1 %v2730_v38  ;;  %v3679_v38 = vld [vmem:[#allocation13_spill] sm:$0xff]  ;;  %v1380_v27 = vld.sshfl [vmem:[#allocation1 + $0x30] sm:$0xff pattern:$0x73625140] }
  0xa4   :  { %1475 = vmatpush.bf16.msrb.mxu2 %v2735_v39 }
  0xa5   :  { %1488 = vmatpush.bf16.msrb.mxu3 %v2740_v40  ;;  %1450 = vmatpush.bf16.msrb.mxu0 %v3677_v30  ;;  %v3680_v40 = vld [vmem:[#allocation14_spill] sm:$0xff] }
  0xa6   :  { %v1141_v6 = vpop.f32.mrf.mxu2  ;;  %v1117_v10 = vpop.f32.mrf.mxu0  ;;  %v1378_v30 = vld.sshfl [vmem:[#allocation1 + $0x20] sm:$0xff pattern:$0x73625140] }
  0xa7   :  { %1463 = vmatpush.bf16.msrb.mxu1 %v2759_v43  ;;  %v1142_v8 = vadd.f32 %v1141_v6, %v1129_v5  ;;  %v1154_v9 = vpop.f32.mrf.mxu3  ;;  %v1130_v13 = vpop.f32.mrf.mxu1  ;;  %v3681_v43 = vld [vmem:[#allocation15_spill] sm:$0xff]  ;;  %v3692_v6 = vld [vmem:[#allocation34_spill] sm:$0xff]  ;;  %v3694_v10 = vld [vmem:[#allocation40_spill] sm:$0xff] }
  0xa8   :  { %1476 = vmatpush.bf16.msrb.mxu2 %v2764_v44  ;;  %v3696_v13 = vld [vmem:[#allocation43_spill] sm:$0xff] }
  0xa9   :  { %1489 = vmatpush.bf16.msrb.mxu3 %v2771_v45  ;;  %v1155_v12 = vadd.f32 %v1154_v9, %v1142_v8  ;;  %1451 = vmatpush.bf16.msrb.mxu0 %v3678_v31  ;;  %v3693_v8 = vld [vmem:[#allocation39_spill] sm:$0xff] }
  0xab   :  { %1464 = vmatpush.bf16.msrb.mxu1 %v2783_v47 }
  0xac   :  { %1477 = vmatpush.bf16.msrb.mxu2 %v2788_v48 }
  0xad   :  { %1490 = vmatpush.bf16.msrb.mxu3 %v2795_v49  ;;  %1452 = vmatpush.bf16.msrb.mxu0 %v3679_v38  ;;  %v3682_v49 = vld [vmem:[#allocation16_spill] sm:$0xff] }
  0xae   :  { %v1143_v14 = vpop.f32.mrf.mxu2 }
  0xaf   :  { %1465 = vmatpush.bf16.msrb.mxu1 %v2805_v51  ;;  %v1156_v16 = vpop.f32.mrf.mxu3 }
  0xb0   :  { %1478 = vmatpush.bf16.msrb.mxu2 %v2818_v55 }
  0xb1   :  { %1491 = vmatpush.bf16.msrb.mxu3 %v2828_v58  ;;  %1453 = vmatpush.bf16.msrb.mxu0 %v3680_v40  ;;  %v1375_v58 = vld.sshfl [vmem:[#allocation1 + $0x8] sm:$0xff pattern:$0x73625140] }
  0xb2   :  { %1431 = vmatmul.bf16.vlgmr.msra.gmra.mxu2 %v1375_v58  ;;  %v3702_v40 = vld [vmem:[#allocation51_spill] sm:$0xff] }
  0xb3   :  { %1466 = vmatpush.bf16.msrb.mxu1 %v2840_v60  ;;  %v3684_v60 = vld [vmem:[#allocation17_spill] sm:$0xff] }
  0xb4   :  { %1479 = vmatpush.bf16.msrb.mxu2 %v2845_v61  ;;  %v1376_v61 = vld.sshfl [vmem:[#allocation1 + $0x10] sm:$0xff pattern:$0x73625140] }
  0xb5   :  { %1492 = vmatpush.bf16.msrb.mxu3 %v2852_v62  ;;  %1454 = vmatpush.bf16.msrb.mxu0 %v3681_v43 }
  0xb6   :  { %1444 = vmatmul.bf16.vlgmr.msra.gmra.mxu3 %v1376_v61 }
  0xb7   :  { %1467 = vmatpush.bf16.msrb.mxu1 %v2864_v22  ;;  %v3685_v22 = vld [vmem:[#allocation28_spill] sm:$0xff] }
  0xb8   :  { %1480 = vmatpush.bf16.msrb.mxu2 %v2869_v32  ;;  %v1374_v32 = vld.sshfl [vmem:[#allocation1] sm:$0xff pattern:$0x73625140] }
  0xb9   :  { %1493 = vmatpush.bf16.msrb.mxu3 %v2876_v34  ;;  %1455 = vmatpush.bf16.msrb.mxu0 %v3682_v49  ;;  %v3704_v49 = vld [vmem:[#allocation50_spill] sm:$0xff] }
  0xba   :  { %1418 = vmatmul.bf16.vlgmr.msra.gmra.mxu1 %v1374_v32  ;;  %v3709_v32 = vld [vmem:[#allocation18_spill] sm:$0xff] }
  0xbb   :  { %1468 = vmatpush.bf16.msrb.mxu1 %v2888_v36  ;;  %v3687_v36 = vld [vmem:[#allocation31_spill] sm:$0xff] }
  0xbc   :  { %1481 = vmatpush.bf16.msrb.mxu2 %v2893_v37 }
  0xbd   :  { %1494 = vmatpush.bf16.msrb.mxu3 %v2900_v42  ;;  %1456 = vmatpush.bf16.msrb.mxu0 %v3684_v60  ;;  %v3688_v42 = vld [vmem:[#allocation32_spill] sm:$0xff] }
  0xbe   :  { %v1167_v17 = vpop.f32.mrf.mxu0 }
  0xbf   :  { %1469 = vmatpush.bf16.msrb.mxu1 %v2912_v63  ;;  %v1180_v18 = vpop.f32.mrf.mxu1  ;;  %v1168_v44 = vadd.f32 %v1167_v17, %v1155_v12  ;;  %v3695_v12 = vld [vmem:[#allocation38_spill] sm:$0xff] }
  0xc0   :  { %1482 = vmatpush.bf16.msrb.mxu2 %v2917_v35  ;;  %v3686_v35 = vld [vmem:[#allocation26_spill] sm:$0xff] }
  0xc1   :  { %1495 = vmatpush.bf16.msrb.mxu3 %v2924_v59  ;;  %v1181_v51 = vadd.f32 %v1180_v18, %v1168_v44  ;;  %v3683_v59 = vld [vmem:[#allocation27_spill] sm:$0xff]  ;;  %v3697_v18 = vld [vmem:[#allocation44_spill] sm:$0xff] }
  0xc3   :  { %1514 = vmatpush.bf16.msra.mxu1 %v3686_v35 }
  0xc4   :  { %1527 = vmatpush.bf16.msra.mxu2 %v3683_v59  ;;  %v3706_v59 = vld [vmem:[#allocation56_spill] sm:$0xff] }
  0xc5   :  { %1540 = vmatpush.bf16.msra.mxu3 %v3685_v22  ;;  %v3708_v22 = vld [vmem:[#allocation58_spill] sm:$0xff] }
  0xc6   :  { %v1193_v19 = vpop.f32.mrf.mxu2  ;;  %v1169_v23 = vpop.f32.mrf.mxu0  ;;  %1496 = vmatmul.bf16.vlgmr.msrb.gmra.mxu3 %v1380_v27  ;;  %v3736_v27 = vld [vmem:[#allocation53_spill] sm:$0xff] }
  0xc7   :  { %v1206_v20 = vpop.f32.mrf.mxu3  ;;  %v1182_v24 = vpop.f32.mrf.mxu1  ;;  %v1194_v62 = vadd.f32 %v1193_v19, %v1181_v51  ;;  %1515 = vmatpush.bf16.msra.mxu1 %v3689_v1  ;;  %v1379_v19 = vld.sshfl [vmem:[#allocation1 + $0x28] sm:$0xff pattern:$0x73625140]  ;;  %v3718_v1 = vld [vmem:[#allocation69_spill] sm:$0xff] }
  0xc8   :  { %1528 = vmatpush.bf16.msra.mxu2 %v3687_v36  ;;  %v3698_v23 = vld [vmem:[#allocation42_spill] sm:$0xff]  ;;  %v3699_v24 = vld [vmem:[#allocation47_spill] sm:$0xff] }
  0xc9   :  { %v1207_v37 = vadd.f32 %v1206_v20, %v1194_v62  ;;  %1541 = vmatpush.bf16.msra.mxu3 %v3688_v42  ;;  %1483 = vmatmul.bf16.vlgmr.msrb.gmra.mxu2 %v1379_v19  ;;  %v3705_v51 = vld [vmem:[#allocation55_spill] sm:$0xff]  ;;  %v3711_v36 = vld [vmem:[#allocation62_spill] sm:$0xff]  ;;  %v3713_v42 = vld [vmem:[#allocation61_spill] sm:$0xff] }
  0xca   :  { %1470 = vmatmul.bf16.vlgmr.msrb.gmra.mxu1 %v1378_v30  ;;  %v3729_v19 = vld [vmem:[#allocation25_spill] sm:$0xff]  ;;  %v3739_v30 = vld [vmem:[#allocation60_spill] sm:$0xff] }
  0xcb   :  { %1516 = vmatpush.bf16.msra.mxu1 %v3692_v6  ;;  %v3722_v6 = vld [vmem:[#allocation73_spill] sm:$0xff] }
  0xcc   :  { %1529 = vmatpush.bf16.msra.mxu2 %v3690_v2  ;;  %v3720_v2 = vld [vmem:[#allocation22_spill] sm:$0xff] }
  0xcd   :  { %1542 = vmatpush.bf16.msra.mxu3 %v3691_v4  ;;  %v3721_v4 = vld [vmem:[#allocation68_spill] sm:$0xff] }
  0xce   :  { %v1195_v26 = vpop.f32.mrf.mxu2 }
  0xcf   :  { %v1208_v29 = vpop.f32.mrf.mxu3  ;;  %1517 = vmatpush.bf16.msra.mxu1 %v3695_v12  ;;  %v3700_v26 = vld [vmem:[#allocation48_spill] sm:$0xff] }
  0xd0   :  { %1530 = vmatpush.bf16.msra.mxu2 %v3693_v8  ;;  %v1368_v8 = vld [vmem:[%s3533_s1 + $0x18] sm:$0xff] }
  0xd1   :  { %1543 = vmatpush.bf16.msra.mxu3 %v3694_v10  ;;  %v3724_v10 = vld [vmem:[#allocation23_spill] sm:$0xff]  ;;  %v3725_v12 = vld [vmem:[#allocation72_spill] sm:$0xff] }
  0xd3   :  { %1518 = vmatpush.bf16.msra.mxu1 %v3698_v23 }
  0xd4   :  { %1531 = vmatpush.bf16.msra.mxu2 %v3696_v13  ;;  %v3726_v13 = vld [vmem:[#allocation77_spill] sm:$0xff] }
  0xd5   :  { %1544 = vmatpush.bf16.msra.mxu3 %v3697_v18 }
  0xd8   :  { %1532 = vmatpush.bf16.msra.mxu2 %v3699_v24  ;;  %v3734_v24 = vld [vmem:[#allocation45_spill] sm:$0xff] }
  0xd9   :  { %1545 = vmatpush.bf16.msra.mxu3 %v3700_v26  ;;  %v3735_v26 = vld [vmem:[#allocation49_spill] sm:$0xff] }
  0xdc   :  { %1533 = vmatpush.bf16.msra.mxu2 %v3702_v40 }
  0xde   :  { %v1219_v39 = vpop.f32.mrf.mxu0 }
  0xdf   :  { %v1232_v41 = vpop.f32.mrf.mxu1  ;;  %v1220_v52 = vadd.f32 %v1219_v39, %v1207_v37  ;;  %v3701_v39 = vld [vmem:[#allocation46_spill] sm:$0xff]  ;;  %v3712_v37 = vld [vmem:[#allocation20_spill] sm:$0xff] }
  0xe0   :  { %1519 = vmatpush.bf16.msra.mxu1 %v3701_v39  ;;  %1534 = vmatpush.bf16.msra.mxu2 %v3705_v51  ;;  %v3743_v39 = vld [vmem:[#allocation75_spill] sm:$0xff] }
  0xe1   :  { %v1233_v5 = vadd.f32 %v1232_v41, %v1220_v52  ;;  %v3716_v52 = vld [vmem:[#allocation21_spill] sm:$0xff] }
  0xe4   :  { %1520 = vmatpush.bf16.msra.mxu1 %v3704_v49  ;;  %1579 = vmatpush.bf16.msrb.mxu2 %v3145_v57 }
  0xe6   :  { %v1245_v45 = vpop.f32.mrf.mxu2  ;;  %v1221_v48 = vpop.f32.mrf.mxu0 }
  0xe7   :  { %v1258_v47 = vpop.f32.mrf.mxu3  ;;  %v1234_v55 = vpop.f32.mrf.mxu1  ;;  %v1246_v9 = vadd.f32 %v1245_v45, %v1233_v5  ;;  %v3703_v45 = vld [vmem:[#allocation52_spill] sm:$0xff] }
  0xe8   :  { %1546 = vmatpush.bf16.msra.mxu3 %v3703_v45  ;;  %v1377_v48 = vld.sshfl [vmem:[#allocation1 + $0x18] sm:$0xff pattern:$0x73625140]  ;;  %v1367_v55 = vld [vmem:[%s3533_s1 + $0x10] sm:$0xff]  ;;  %1580 = vmatpush.bf16.msrb.mxu2 %v3177_v33 }
  0xe9   :  { %v1259_v14 = vadd.f32 %v1258_v47, %v1246_v9  ;;  %1383 = vst [vmem:[#allocation1] ss:$4 sm:$0xff] %v1367_v55  ;;  %v3714_v33 = vld [vmem:[#allocation65_spill] sm:$0xff]  ;;  %v3723_v9 = vld [vmem:[#allocation74_spill] sm:$0xff] }
  0xea   :  { %v1381_v5 = vld.sshfl [vmem:[#allocation1 + $0x38] sm:$0xff pattern:$0x73625140] }
  0xeb   :  { %1385 = vst [vmem:[#allocation1 + $0x20] ss:$4 sm:$0xff] %v1368_v8 }
  0xec   :  { %1547 = vmatpush.bf16.msra.mxu3 %v3706_v59  ;;  %1581 = vmatpush.bf16.msrb.mxu2 %v3210_v53  ;;  %v3719_v53 = vld [vmem:[#allocation70_spill] sm:$0xff] }
  0xee   :  { %v1247_v63 = vpop.f32.mrf.mxu2 }
  0xef   :  { %v1260_v34 = vpop.f32.mrf.mxu3  ;;  %v3707_v63 = vld [vmem:[#allocation54_spill] sm:$0xff] }
  0xf0   :  { %1592 = vmatpush.bf16.msrb.mxu3 %v3150_v50  ;;  %1521 = vmatpush.bf16.msra.mxu1 %v3707_v63  ;;  %v1387_v57 = vld.sshfl [vmem:[#allocation1 + $0x8] sm:$0xff pattern:$0x73625140]  ;;  %v1388_v34 = vld.sshfl [vmem:[#allocation1 + $0x10] sm:$0xff pattern:$0x73625140] }
  0xf1   :  { %1535 = vmatmul.bf16.vlgmr.msra.gmra.mxu2 %v1387_v57  ;;  %v3710_v50 = vld [vmem:[#allocation19_spill] sm:$0xff]  ;;  %1548 = vmatmul.bf16.vlgmr.msra.gmra.mxu3 %v1388_v34  ;;  %v1386_v35 = vld.sshfl [vmem:[#allocation1] sm:$0xff pattern:$0x73625140] }
  0xf2   :  { %1582 = vmatpush.bf16.msrb.mxu2 %v3714_v33  ;;  %v1392_v18 = vld.sshfl [vmem:[#allocation1 + $0x30] sm:$0xff pattern:$0x73625140]  ;;  %v1390_v23 = vld.sshfl [vmem:[#allocation1 + $0x20] sm:$0xff pattern:$0x73625140] }
  0xf3   :  { %1522 = vmatmul.bf16.vlgmr.msra.gmra.mxu1 %v1386_v35  ;;  %v1393_v40 = vld.sshfl [vmem:[#allocation1 + $0x38] sm:$0xff pattern:$0x73625140] }
  0xf4   :  { %1566 = vmatpush.bf16.msrb.mxu1 %v3708_v22  ;;  %1593 = vmatpush.bf16.msrb.mxu3 %v3189_v54  ;;  %v3715_v54 = vld [vmem:[#allocation66_spill] sm:$0xff] }
  0xf6   :  { %1583 = vmatpush.bf16.msrb.mxu2 %v3718_v1 }
  0xf8   :  { %1567 = vmatpush.bf16.msrb.mxu1 %v3162_v28  ;;  %1594 = vmatpush.bf16.msrb.mxu3 %v3711_v36  ;;  %v3717_v28 = vld [vmem:[#allocation64_spill] sm:$0xff] }
  0xfa   :  { %1584 = vmatpush.bf16.msrb.mxu2 %v3722_v6 }
  0xfc   :  { %1568 = vmatpush.bf16.msrb.mxu1 %v3713_v42  ;;  %1595 = vmatpush.bf16.msrb.mxu3 %v3715_v54 }
  0xfe   :  { %v1271_v16 = vpop.f32.mrf.mxu0  ;;  %1585 = vmatpush.bf16.msrb.mxu2 %v3726_v13 }
  0xff   :  { %v1284_v17 = vpop.f32.mrf.mxu1  ;;  %v1272_v20 = vadd.f32 %v1271_v16, %v1259_v14  ;;  %v3727_v14 = vld [vmem:[#allocation24_spill] sm:$0xff] }
 0x100   :  { %1569 = vmatpush.bf16.msrb.mxu1 %v3717_v28  ;;  %1596 = vmatpush.bf16.msrb.mxu3 %v3719_v53  ;;  %v3728_v16 = vld [vmem:[#allocation76_spill] sm:$0xff] }
 0x101   :  { %v1285_v29 = vadd.f32 %v1284_v17, %v1272_v20  ;;  %v1391_v17 = vld.sshfl [vmem:[#allocation1 + $0x28] sm:$0xff pattern:$0x73625140]  ;;  %v3730_v20 = vld [vmem:[#allocation29_spill] sm:$0xff] }
 0x102   :  { %1586 = vmatpush.bf16.msrb.mxu2 %v3330_v7  ;;  %v3732_v7 = vld [vmem:[#allocation37_spill] sm:$0xff] }
 0x104   :  { %1570 = vmatpush.bf16.msrb.mxu1 %v3721_v4  ;;  %1597 = vmatpush.bf16.msrb.mxu3 %v3723_v9 }
 0x105   :  { %1587 = vmatmul.bf16.vlgmr.msrb.gmra.mxu2 %v1391_v17 }
 0x106   :  { %v1297_v31 = vpop.f32.mrf.mxu2  ;;  %v1273_v43 = vpop.f32.mrf.mxu0 }
 0x107   :  { %v1310_v38 = vpop.f32.mrf.mxu3  ;;  %v1298_v41 = vadd.f32 %v1297_v31, %v1285_v29  ;;  %v1286_v44 = vpop.f32.mrf.mxu1  ;;  %v1389_v29 = vld.sshfl [vmem:[#allocation1 + $0x18] sm:$0xff pattern:$0x73625140]  ;;  %v3740_v31 = vld [vmem:[#allocation63_spill] sm:$0xff] }
 0x108   :  { %1571 = vmatpush.bf16.msrb.mxu1 %v3725_v12  ;;  %1598 = vmatpush.bf16.msrb.mxu3 %v3313_v46  ;;  %v3731_v46 = vld [vmem:[#allocation33_spill] sm:$0xff] }
 0x109   :  { %v1311_v47 = vadd.f32 %v1310_v38, %v1298_v41  ;;  %v3742_v38 = vld [vmem:[#allocation71_spill] sm:$0xff] }
 0x10b   :  { %v1314_v58 = vmax.f32 %v1311_v47, 0.0 }
 0x10c   :  { %1572 = vmatpush.bf16.msrb.mxu1 %v3728_v16  ;;  %1599 = vmatpush.bf16.msrb.mxu3 %v3337_v11  ;;  %v3733_v11 = vld [vmem:[#allocation41_spill] sm:$0xff] }
 0x10d   :  { %v1315_v60 = vpack.c.bf16 %v1314_v58, %v1314_v58 }
 0x10e   :  { %v1299_v61 = vpop.f32.mrf.mxu2 }
 0x10f   :  { %v1312_v62 = vpop.f32.mrf.mxu3  ;;  %2288 = vmatmul.msk.bf16.vlgmr.msra.gmra.mxu0 %vm1331_vm0, %v1315_v60  ;;  %1600 = vmatmul.bf16.vlgmr.msrb.gmra.mxu3 %v1392_v18 }
 0x110   :  { %1501 = vmatpush.bf16.msra.mxu0 %v3709_v32  ;;  %1573 = vmatpush.bf16.msrb.mxu1 %v3325_v3  ;;  %v3737_v3 = vld [vmem:[#allocation57_spill] sm:$0xff] }
 0x113   :  { %1574 = vmatmul.bf16.vlgmr.msrb.gmra.mxu1 %v1390_v23 }
 0x114   :  { %1502 = vmatpush.bf16.msra.mxu0 %v3710_v50  ;;  %1629 = vmatpush.bf16.msra.mxu1 %v3409_v21  ;;  %v3738_v21 = vld [vmem:[#allocation59_spill] sm:$0xff] }
 0x118   :  { %1503 = vmatpush.bf16.msra.mxu0 %v3712_v37  ;;  %1630 = vmatpush.bf16.msra.mxu1 %v3415_v25  ;;  %v3741_v25 = vld [vmem:[#allocation67_spill] sm:$0xff] }
 0x11c   :  { %1504 = vmatpush.bf16.msra.mxu0 %v3716_v52 }
 0x11f   :  { %1457 = vmatmul.bf16.vlgmr.msrb.gmra.mxu0 %v1377_v48 }
 0x120   :  { %1505 = vmatpush.bf16.msra.mxu0 %v3720_v2 }
 0x124   :  { %1506 = vmatpush.bf16.msra.mxu0 %v3724_v10 }
 0x128   :  { %1507 = vmatpush.bf16.msra.mxu0 %v3727_v14 }
 0x12c   :  { %1508 = vmatpush.bf16.msra.mxu0 %v3729_v19 }
 0x12f   :  { %1509 = vmatmul.bf16.vlgmr.msra.gmra.mxu0 %v1381_v5 }
 0x130   :  { %1553 = vmatpush.bf16.msrb.mxu0 %v3730_v20 }
 0x134   :  { %1554 = vmatpush.bf16.msrb.mxu0 %v3731_v46 }
 0x135   :  { %v1432_v44 = vpop.f32.mrf.mxu2 }
 0x137   :  { %v1419_v41 = vpop.f32.mrf.mxu1 }
 0x138   :  { %1555 = vmatpush.bf16.msrb.mxu0 %v3732_v7  ;;  %v1420_v43 = vadd.f32 %v3384_v0, %v1419_v41 }
 0x139   :  { %v1445_v45 = vpop.f32.mrf.mxu3 }
 0x13a   :  { %v1433_v47 = vadd.f32 %v1432_v44, %v1420_v43 }
 0x13c   :  { %1556 = vmatpush.bf16.msrb.mxu0 %v3733_v11  ;;  %v1446_v48 = vadd.f32 %v1445_v45, %v1433_v47 }
 0x13d   :  { %v1434_v51 = vpop.f32.mrf.mxu2 }
 0x13f   :  { %v1421_v49 = vpop.f32.mrf.mxu1 }
 0x140   :  { %1557 = vmatpush.bf16.msrb.mxu0 %v3734_v24 }
 0x141   :  { %v1447_v55 = vpop.f32.mrf.mxu3 }
 0x144   :  { %1558 = vmatpush.bf16.msrb.mxu0 %v3735_v26 }
 0x147   :  { %v1471_v58 = vpop.f32.mrf.mxu1 }
 0x148   :  { %1559 = vmatpush.bf16.msrb.mxu0 %v3736_v27 }
 0x149   :  { %v1497_v60 = vpop.f32.mrf.mxu3 }
 0x14c   :  { %1560 = vmatpush.bf16.msrb.mxu0 %v3737_v3  ;;  %v1484_v59 = vpop.f32.mrf.mxu2 }
 0x14f   :  { %1561 = vmatmul.bf16.vlgmr.msrb.gmra.mxu0 %v1389_v29  ;;  %v1473_v61 = vpop.f32.mrf.mxu1 }
 0x150   :  { %1605 = vmatpush.bf16.msra.mxu0 %v3738_v21 }
 0x151   :  { %v1499_v22 = vpop.f32.mrf.mxu3 }
 0x154   :  { %1606 = vmatpush.bf16.msra.mxu0 %v3739_v30  ;;  %v1486_v0 = vpop.f32.mrf.mxu2 }
 0x158   :  { %1607 = vmatpush.bf16.msra.mxu0 %v3740_v31 }
 0x15c   :  { %1608 = vmatpush.bf16.msra.mxu0 %v3741_v25 }
 0x160   :  { %1609 = vmatpush.bf16.msra.mxu0 %v3742_v38 }
 0x164   :  { %1610 = vmatpush.bf16.msra.mxu0 %v3743_v39 }
 0x168   :  { %1611 = vmatpush.bf16.msra.mxu0 %v3318_v56  ;;  %v3511_v56 = vld [vmem:[%s3537_s5] ss:$0 sm:$0xff] }
 0x16c   :  { %1612 = vmatpush.bf16.msra.mxu0 %v3342_v15 }
 0x16f   :  { %1613 = vmatmul.bf16.vlgmr.msra.gmra.mxu0 %v1393_v40 }
 0x170   :  { %v1523_v34 = vpop.f32.mrf.mxu1 }
 0x174   :  { %v1536_v50 = vpop.f32.mrf.mxu2  ;;  %v1549_v35 = vpop.f32.mrf.mxu3 }
 0x178   :  { %v1525_v37 = vpop.f32.mrf.mxu1 }
 0x17c   :  { %v1538_v33 = vpop.f32.mrf.mxu2  ;;  %v1551_v52 = vpop.f32.mrf.mxu3 }
 0x188   :  { %v1588_v8 = vpop.f32.mrf.mxu2 }
 0x18c   :  { %v1344_v15 = vpop.f32.mrf.mxu0 }
 0x18d   :  { %v1345_v62 = vadd.f32 %v3511_v56, %v1344_v15 }
 0x18f   :  { %v1348_v63 = vmul.f32 %v1345_v62, %v1345_v62 }
 0x190   :  { %v1575_v5 = vpop.f32.mrf.mxu1  ;;  %v1590_v16 = vpop.f32.mrf.mxu2 }
 0x191   :  { %v1350_v32 = vsel %vm1349_vm1, %v1348_v63, 0.0 }
 0x192   :  { %1351 = vadd.xlane.f32.xlu0 %v1350_v32  ;;  %v1601_v10 = vpop.f32.mrf.mxu3 }
 0x194   :  { %v1346_v57 = vpop.f32.mrf.mxu0 }
 0x198   :  { %v1577_v14 = vpop.f32.mrf.mxu1 }
 0x19a   :  { %v1603_v17 = vpop.f32.mrf.mxu3 }
 0x19c   :  { %v1458_v36 = vpop.f32.mrf.mxu0 }
 0x19d   :  { %v1459_v42 = vadd.f32 %v1458_v36, %v1446_v48  ;;  %v1682_v36 = vlaneseq }
 0x19f   :  { %v1472_v54 = vadd.f32 %v1471_v58, %v1459_v42  ;;  %v1683_v37 = vshrl.u32 %v1682_v36, 7  ;;  %v1685_v42 = vand.u32 127, %v1682_v36 }
 0x1a1   :  { %v1485_v28 = vadd.f32 %v1484_v59, %v1472_v54  ;;  %v1686_v33 = vsub.s32 %v1683_v37, %v1685_v42 }
 0x1a3   :  { %v1498_v1 = vadd.f32 %v1497_v60, %v1485_v28  ;;  %v1688_v54 = vsub.s32 0, %v1686_v33  ;;  %vm1687_vm9 = vcmp.lt.s32.totalorder %v1686_v33, 0 }
 0x1a4   :  { %v1460_v53 = vpop.f32.mrf.mxu0 }
 0x1a5   :  { %v1689_v52 = vsel %vm1687_vm9, %v1688_v54, %v1686_v33 }
 0x1a6   :  { %vm1690_vm10 = vcmp.eq.s32.totalorder %v1689_v52, 4 }
 0x1ac   :  { %v1510_v2 = vpop.f32.mrf.mxu0 }
 0x1ad   :  { %v1511_v4 = vadd.f32 %v1510_v2, %v1498_v1 }
 0x1af   :  { %v1524_v6 = vadd.f32 %v1523_v34, %v1511_v4 }
 0x1b1   :  { %v1537_v9 = vadd.f32 %v1536_v50, %v1524_v6 }
 0x1b3   :  { %v1550_v12 = vadd.f32 %v1549_v35, %v1537_v9 }
 0x1b4   :  { %v1512_v13 = vpop.f32.mrf.mxu0 }
 0x1cc   :  { %v1562_v18 = vpop.f32.mrf.mxu0 }
 0x1cd   :  { %v1563_v20 = vadd.f32 %v1562_v18, %v1550_v12 }
 0x1cf   :  { %v1576_v23 = vadd.f32 %v1575_v5, %v1563_v20 }
 0x1d1   :  { %v1589_v46 = vadd.f32 %v1588_v8, %v1576_v23  ;;  %v2491_v23 = vmov 8.0  }
 0x1d3   :  { %v1602_v7 = vadd.f32 %v1601_v10, %v1589_v46 }
 0x1d4   :  { %v1564_v19 = vpop.f32.mrf.mxu0 }
 0x1ec   :  { %v1614_v11 = vpop.f32.mrf.mxu0 }
 0x1ed   :  { %v1615_v24 = vadd.f32 %v1614_v11, %v1602_v7 }
 0x1ef   :  { %v1618_v26 = vmax.f32 %v1615_v24, 0.0 }
 0x1f1   :  { %v1619_v27 = vpack.c.bf16 %v1618_v26, %v1618_v26 }
 0x1f3   :  { %2289 = vmatmul.msk.bf16.vlgmr.msra.gmra.mxu1 %vm1331_vm0, %v1619_v27 }
 0x1f4   :  { %v1616_v3 = vpop.f32.mrf.mxu0 }
 0x205   :  { %v1352_v29 = vpop.xlane.xlu0 %1351 }
 0x206   :  { %v1353_v21 = vmax.f32 %v1352_v29, 1e-24 }
 0x208   :  { %2428 = vrsqrt.f32 %v1353_v21  ;;  %vm1360_vm3 = vweird.f32 %v1353_v21 }
 0x20e   :  { %v2429_v30 = vpop.eup %2428 }
 0x20f   :  { %v1355_v31 = vmul.f32 %v2429_v30, %v1353_v21  ;;  %vm1361_vm2 = vweird.f32 %v2429_v30 }
 0x210   :  { %vm1362_vm4 = vmor %vm1360_vm3, %vm1361_vm2 }
 0x211   :  { %v1356_v25 = vmul.f32 %v2429_v30, %v1355_v31 }
 0x213   :  { %v1357_v38 = vmul.f32 0.5, %v1356_v25 }
 0x215   :  { %v1358_v39 = vsub.f32 1.5, %v1357_v38 }
 0x217   :  { %v1359_v40 = vmul.f32 %v2429_v30, %v1358_v39 }
 0x219   :  { %v1363_v41 = vsel %vm1362_vm4, %v2429_v30, %v1359_v40 }
 0x21a   :  { %v1364_v43 = vmul.f32 %v1363_v41, %v1345_v62 }
 0x21c   :  { %v1652_v44 = vmul.f32 2.0, %v1364_v43  ;;  %1657 = vst.msk [vmem:[#allocation3 + $0x4] sm:$0xf] %vm1349_vm1, %v1364_v43 }
 0x21e   :  { %1653 = vst.msk [vmem:[#allocation2] sm:$0xf] %vm1349_vm1, %v1652_v44 }
 0x270   :  { %v1632_v45 = vpop.f32.mrf.mxu1 }
 0x271   :  { %v1633_v47 = vadd.f32 %v3511_v56, %v1632_v45 }
 0x273   :  { %v1636_v48 = vmul.f32 %v1633_v47, %v1633_v47 }
 0x275   :  { %v1637_v49 = vsel %vm1349_vm1, %v1636_v48, 0.0 }
 0x276   :  { %1638 = vadd.xlane.f32.xlu0 %v1637_v49 }
 0x278   :  { %v1634_v51 = vpop.f32.mrf.mxu1 }
 0x2e9   :  { %v1639_v55 = vpop.xlane.xlu0 %1638 }
 0x2ea   :  { %v1640_v58 = vmax.f32 %v1639_v55, 1e-24 }
 0x2ec   :  { %2430 = vrsqrt.f32 %v1640_v58  ;;  %vm1647_vm6 = vweird.f32 %v1640_v58 }
 0x2f2   :  { %v2431_v59 = vpop.eup %2430 }
 0x2f3   :  { %v1642_v60 = vmul.f32 %v2431_v59, %v1640_v58  ;;  %vm1648_vm5 = vweird.f32 %v2431_v59 }
 0x2f4   :  { %vm1649_vm7 = vmor %vm1647_vm6, %vm1648_vm5 }
 0x2f5   :  { %v1643_v15 = vmul.f32 %v2431_v59, %v1642_v60 }
 0x2f7   :  { %v1644_v61 = vmul.f32 0.5, %v1643_v15 }
 0x2f9   :  { %v1645_v62 = vsub.f32 1.5, %v1644_v61 }
 0x2fb   :  { %v1646_v0 = vmul.f32 %v2431_v59, %v1645_v62 }
 0x2fd   :  { %v1650_v63 = vsel %vm1649_vm7, %v2431_v59, %v1646_v0 }
 0x2fe   :  { %v1651_v22 = vmul.f32 %v1650_v63, %v1633_v47 }
 0x300   :  { %v1654_v56 = vmul.f32 2.0, %v1651_v22  ;;  %1656 = vst.msk [vmem:[#allocation3] sm:$0xf] %vm1349_vm1, %v1651_v22  ;;  %v1712_v2 = vmul.f32 %v1651_v22, %v1364_v43 }
 0x302   :  { %1655 = vst.msk [vmem:[#allocation2 + $0x4] sm:$0xf] %vm1349_vm1, %v1654_v56  ;;  %v1713_v5 = vsel %vm1349_vm1, %v1712_v2, 0.0 }
 0x307   :  { %v1660_v32 = vld [vmem:[#allocation3] sm:$0xff] }
 0x308   :  { %v1661_v57 = vpack.c.bf16 %v1660_v32, %v1660_v32 }
 0x309   :  { %v1658_v50 = vld [vmem:[#allocation2] sm:$0xff] }
 0x30a   :  { %v1667_v34 = vsel %vm1662_vm8, %v1661_v57, 0  ;;  %v1659_v35 = vpack.c.bf16 %v1658_v50, %v1658_v50 }
 0x30b   :  { %1676 = vmatpush.bf16.xpose.msra.mxu2 %v1667_v34 }
 0x312   :  { %2290 = vmatmul.msk.bf16.vlgmr.msra.gmra.mxu2 %vm1662_vm8, %v1659_v35 }
 0x395   :  { %v1678_v28 = vpop.f32.mrf.mxu2 }
 0x396   :  { %v1691_v1 = vsel %vm1690_vm10, -1000000.0, %v1678_v28 }
 0x397   :  { %v1694_v53 = vsel %vm1692_vm11, %v1691_v1, -inf  ;;  %1693 = vst.msk [vmem:[#allocation4] sm:$0xff] %vm1692_vm11, %v1691_v1 }
 0x398   :  { %1695 = vmax.xlane.f32.xlu1 %v1694_v53  ;;  %1746 = dma.vmem_to_hbm [thread:$0]  %s1742_s19, 128, %s1744_s17, [#allocation5]  }
 0x39d   :  { %v1680_v4 = vpop.f32.mrf.mxu2 }
 0x3a0   :  { %1714 = vadd.xlane.f32.xlu1 %v1713_v5 }
 0x40b   :  { %v1696_v6 = vpop.xlane.xlu1 %1695 }
 0x40c   :  { %v1697_v8 = vsub.f32 %v1691_v1, %v1696_v6 }
 0x40e   :  { %v1698_v9 = vmul.f32 1.442695, %v1697_v8 }
 0x410   :  { %2432 = vpow2.f32 %v1698_v9 }
 0x411   :  { %2434 = vrcp.f32 %v2491_v23 }
 0x413   :  { %v1715_v10 = vpop.xlane.xlu1 %1714 }
 0x414   :  { %v1716_v12 = vrot.slane %v1715_v10, 4 }
 0x416   :  { %v2433_v13 = vpop.eup %2432  ;;  %v1717_v14 = vadd.f32 %v1716_v12, %v1715_v10 }
 0x417   :  { %v1700_v16 = vsel %vm1692_vm11, %v2433_v13, 0.0  ;;  %v2435_v7 = vpop.eup %2434 }
 0x418   :  { %v1718_v17 = vrot.slane %v1717_v14, 2  ;;  %1701 = vadd.xlane.f32.xlu2 %v1700_v16  ;;  %v1727_v24 = vmul.f32 8.0, %v2435_v7  ;;  %vm1731_vm12 = vweird.f32 %v2435_v7 }
 0x41a   :  { %v1719_v18 = vadd.f32 %v1718_v17, %v1717_v14  ;;  %v1728_v3 = vsub.f32 1.0, %v1727_v24 }
 0x41c   :  { %v1720_v19 = vrot.slane %v1719_v18, 1  ;;  %v1729_v30 = vmul.f32 %v2435_v7, %v1728_v3 }
 0x41e   :  { %v1721_v20 = vadd.f32 %v1720_v19, %v1719_v18  ;;  %v1730_v39 = vadd.f32 %v2435_v7, %v1729_v30 }
 0x420   :  { %2421 = vpush %v1721_v20  ;;  %v1732_v44 = vsel %vm1731_vm12, %v2435_v7, %v1730_v39 }
 0x451   :  { %s2422_s6 = spop %2421 }
 0x452   :  { %v1723_v38 = vstv %s2422_s6 }
 0x453   :  { %v1724_v41 = vmul.f32 4.0, %v1723_v38 }
 0x48b   :  { %v1702_v46 = vpop.xlane.xlu2 %1701 }
 0x48c   :  { %2436 = vlog2.f32 %v1702_v46 }
 0x492   :  { %v2437_v11 = vpop.eup %2436 }
 0x493   :  { %v1704_v26 = vmul.f32 0.6931472, %v2437_v11 }
 0x495   :  { %v1705_v27 = vadd.f32 %v1704_v26, %v1696_v6 }
 0x497   :  { %v1706_v29 = vrot.slane %v1705_v27, 4 }
 0x499   :  { %v1707_v21 = vadd.f32 %v1706_v29, %v1705_v27 }
 0x49b   :  { %v1708_v31 = vrot.slane %v1707_v21, 2 }
 0x49d   :  { %v1709_v25 = vadd.f32 %v1708_v31, %v1707_v21 }
 0x49f   :  { %v1710_v40 = vrot.slane %v1709_v25, 1 }
 0x4a1   :  { %v1711_v43 = vadd.f32 %v1710_v40, %v1709_v25 }
 0x4a3   :  { %v1725_v45 = vsub.f32 %v1711_v43, %v1724_v41 }
 0x4a5   :  { %v1733_v47 = vmul.f32 %v1732_v44, %v1725_v45 }
 0x4a7   :  { %1735 = vst.msk [vmem:[#allocation6] sm:$0x1] %vm1734_vm13, %v1733_v47 }
 0x4a8   :  { %1757 = dma.vmem_to_hbm [thread:$0]  %s1753_s21, 16, %s1755_s24, [#allocation7]  }
 0x4a9   :  { %2486 = dma.done.wait [#allocation5], 128  }
 0x4aa   :  { %2487 = vsyncadd [#allocation5], 4294967168 }
 0x4ab   :  { %2488 = dma.done.wait [#allocation7], 16  }
 0x4ac   :  { %2489 = vsyncadd [#allocation7], 4294967280 }
 0x4ad   :  { %1766 = vsyncpa [#allocation5], 1 }
 0x4ae   :  { %1767 = vsyncpa [#allocation7], 1 }

</bundles_post_ra>
